<compile_context>
chip_gen: v7x
topology: tpu7x:2x2x1
jax: 0.10.0
libtpu: 0.0.40
codegen_flags: <defaults>
</compile_context>

<pallas_src>
import functools
import math

import jax
import jax.numpy as jnp
from jax.experimental import pallas as pl
from jax.experimental.pallas import tpu as pltpu


_VMEM_LIMIT = 32 * 1024 * 1024          # comfortable on v5e/v6e/v7x


# ----------------------------------------------------------------------------
# Tile selection helper
# ----------------------------------------------------------------------------
def _pick_tile(dim, target, align):
    """Largest tile <= target that divides dim and is a multiple of `align`
    (or the full dim if dim <= target)."""
    if dim <= target:
        return dim
    t = (target // align) * align
    while t >= align:
        if dim % t == 0:
            return t
        t -= align
    return dim


# ----------------------------------------------------------------------------
# Tiled linear (+ optional activation / fused residual-add + LayerNorm)
# ----------------------------------------------------------------------------
def _linear_kernel(x_ref, w_ref, b_ref, o_ref, acc_ref, *, activation, nsteps):
    k = pl.program_id(2)

    @pl.when(k == 0)
    def _():
        acc_ref[...] = jnp.zeros_like(acc_ref)

    acc_ref[...] += jnp.dot(x_ref[...], w_ref[...],
                            preferred_element_type=jnp.float32)

    @pl.when(k == nsteps - 1)
    def _():
        y = acc_ref[...] + b_ref[...].astype(jnp.float32)
        if activation == "gelu":
            # TODO(synk): BERT/NEZHA checkpoints use exact erf GELU; tanh
            # approximation kept here for guaranteed Mosaic lowering.
            y = jax.nn.gelu(y, approximate=True)
        elif activation == "tanh":
            y = jnp.tanh(y)
        o_ref[...] = y.astype(o_ref.dtype)


def _linear_addln_kernel(x_ref, w_ref, b_ref, r_ref, g_ref, bt_ref,
                         o_ref, acc_ref, *, nsteps, eps):
    k = pl.program_id(2)

    @pl.when(k == 0)
    def _():
        acc_ref[...] = jnp.zeros_like(acc_ref)

    acc_ref[...] += jnp.dot(x_ref[...], w_ref[...],
                            preferred_element_type=jnp.float32)

    @pl.when(k == nsteps - 1)
    def _():
        y = acc_ref[...] + b_ref[...].astype(jnp.float32)
        y = y + r_ref[...].astype(jnp.float32)          # fused residual add
        mu = jnp.mean(y, axis=-1, keepdims=True)        # LN in f32
        var = jnp.mean((y - mu) ** 2, axis=-1, keepdims=True)
        y = (y - mu) * jax.lax.rsqrt(var + eps)
        y = y * g_ref[...].astype(jnp.float32) + bt_ref[...].astype(jnp.float32)
        o_ref[...] = y.astype(o_ref.dtype)


def fused_linear(x, w, b, *, activation="none", residual=None, ln_gamma=None,
                 ln_beta=None, out_dtype=jnp.bfloat16, eps=1e-12,
                 tm_target=256, tn_target=1024, tk_target=768):
    """y = act(x @ w + b)  or  LayerNorm(x @ w + b + residual).

    x: (M, K); w: (K, N); b: (N,).  Operands are fed to the MXU as bf16 with
    an f32 VMEM accumulator.  tk_target=768 makes every K=768 linear a single
    K step; double-buffered footprint at (256, 1024, 768) bf16 is ~6 MiB —
    well inside the explicit 32 MiB budget on every generation (v7x: 64 MiB
    physical).
    """
    M, K = x.shape
    K2, N = w.shape
    assert K == K2
    fuse_ln = residual is not None

    tm = _pick_tile(M, tm_target, 8)
    tk = _pick_tile(K, tk_target, 128)
    tn = N if fuse_ln else _pick_tile(N, tn_target, 128)  # LN needs full rows
    nk = K // tk
    grid = (M // tm, N // tn, nk)

    # Weights/activations are already stored bf16; these casts are no-ops then.
    x_bf = x if x.dtype == jnp.bfloat16 else x.astype(jnp.bfloat16)
    w_bf = w if w.dtype == jnp.bfloat16 else w.astype(jnp.bfloat16)
    b2 = b.reshape(1, N).astype(jnp.float32)

    x_spec = pl.BlockSpec((tm, tk), lambda i, j, k: (i, k))
    w_spec = pl.BlockSpec((tk, tn), lambda i, j, k: (k, j))
    b_spec = pl.BlockSpec((1, tn), lambda i, j, k: (0, j))
    o_spec = pl.BlockSpec((tm, tn), lambda i, j, k: (i, j))

    if fuse_ln:
        kernel = functools.partial(_linear_addln_kernel, nsteps=nk, eps=eps)
        in_specs = [x_spec, w_spec, b_spec,
                    pl.BlockSpec((tm, tn), lambda i, j, k: (i, j)),
                    pl.BlockSpec((1, tn), lambda i, j, k: (0, j)),
                    pl.BlockSpec((1, tn), lambda i, j, k: (0, j))]
        res_bf = (residual if residual.dtype == jnp.bfloat16
                  else residual.astype(jnp.bfloat16))
        args = (x_bf, w_bf, b2, res_bf,
                ln_gamma.reshape(1, N).astype(jnp.float32),
                ln_beta.reshape(1, N).astype(jnp.float32))
    else:
        kernel = functools.partial(_linear_kernel, activation=activation,
                                   nsteps=nk)
        in_specs = [x_spec, w_spec, b_spec]
        args = (x_bf, w_bf, b2)

    return pl.pallas_call(
        kernel,
        out_shape=jax.ShapeDtypeStruct((M, N), out_dtype),
        grid_spec=pltpu.PrefetchScalarGridSpec(
            num_scalar_prefetch=0,
            grid=grid,
            in_specs=in_specs,
            out_specs=o_spec,
            scratch_shapes=[pltpu.VMEM((tm, tn), jnp.float32)]),
        compiler_params=pltpu.CompilerParams(
            dimension_semantics=("parallel", "parallel", "arbitrary"),
            vmem_limit_bytes=_VMEM_LIMIT),
    )(*args)


# ----------------------------------------------------------------------------
# Standalone LayerNorm (embeddings only) — fed bf16, stats in f32
# ----------------------------------------------------------------------------
def _layernorm_kernel(x_ref, g_ref, b_ref, o_ref, *, eps):
    x = x_ref[...].astype(jnp.float32)
    mu = jnp.mean(x, axis=-1, keepdims=True)
    var = jnp.mean((x - mu) ** 2, axis=-1, keepdims=True)
    y = (x - mu) * jax.lax.rsqrt(var + eps)
    o_ref[...] = (y * g_ref[...] + b_ref[...]).astype(o_ref.dtype)


def layernorm(x, gamma, beta, out_dtype=jnp.bfloat16, eps=1e-12, tm_target=256):
    M, H = x.shape
    tm = _pick_tile(M, tm_target, 8)
    x_bf = x if x.dtype == jnp.bfloat16 else x.astype(jnp.bfloat16)
    return pl.pallas_call(
        functools.partial(_layernorm_kernel, eps=eps),
        out_shape=jax.ShapeDtypeStruct((M, H), out_dtype),
        grid=(M // tm,),
        in_specs=[pl.BlockSpec((tm, H), lambda i: (i, 0)),
                  pl.BlockSpec((1, H), lambda i: (0, 0)),
                  pl.BlockSpec((1, H), lambda i: (0, 0))],
        out_specs=pl.BlockSpec((tm, H), lambda i: (i, 0)),
        compiler_params=pltpu.CompilerParams(dimension_semantics=("parallel",)),
    )(x_bf,
      gamma.reshape(1, H).astype(jnp.float32),
      beta.reshape(1, H).astype(jnp.float32))


# ----------------------------------------------------------------------------
# Multi-head self attention (heads indexed straight out of the packed QKV)
# ----------------------------------------------------------------------------
def _attention_kernel(q_ref, k_ref, v_ref, m_ref, o_ref, *,
                      heads_per_block, head_dim, chunk_heads):
    mask = m_ref[0].astype(jnp.float32)            # (1, S) additive bias
    q_all = q_ref[0]                               # (tq, hb*D) bf16 (scale pre-folded)
    k_all = k_ref[0]                               # (S,  hb*D) bf16
    v_all = v_ref[0]
    chunk_lanes = chunk_heads * head_dim
    n_chunks = heads_per_block // chunk_heads
    for c in range(n_chunks):                      # unrolled; small
        outs = []
        for hh in range(chunk_heads):
            h = c * chunk_heads + hh
            sl = slice(h * head_dim, (h + 1) * head_dim)
            q = q_all[:, sl]
            k = k_all[:, sl]
            v = v_all[:, sl]
            s = jax.lax.dot_general(q, k, (((1,), (1,)), ((), ())),
                                    preferred_element_type=jnp.float32)  # (tq,S)
            s = s + mask
            s = s - jnp.max(s, axis=-1, keepdims=True)
            p = jnp.exp(s)
            p = p * pl.reciprocal(jnp.sum(p, axis=-1, keepdims=True), approx=True)
            outs.append(jnp.dot(p.astype(v.dtype), v,
                                preferred_element_type=jnp.float32))
        chunk = outs[0] if len(outs) == 1 else jnp.concatenate(outs, axis=-1)
        # Incremental 128-lane-aligned store; frees per-head intermediates.
        o_ref[0, :, pl.ds(c * chunk_lanes, chunk_lanes)] = chunk.astype(o_ref.dtype)


def attention(qkv, mask_bias, *, num_heads, out_dtype=jnp.bfloat16,
              vmem_budget=20 * 1024 * 1024):
    """qkv: (B, S, 3H) packed [q|k|v]; mask_bias: (B, 1, S) additive f32.

    Grid = (batch, head-groups, query-blocks), all parallel.  The head group
    is chosen as LARGE as possible (VMEM-budgeted) so the grid has few, fat
    steps with a lane-dense output block; query blocking bounds the (tq, S)
    score tile and keeps >=2 parallel units for v7x's two TensorCores.
    """
    B, S, H3 = qkv.shape
    H = H3 // 3
    D = H // num_heads

    tq = _pick_tile(S, 256, 8)

    # Largest head group whose lane width is a multiple of 128 and whose rough
    # double-buffered footprint fits the VMEM budget.
    hb = None
    for cand in range(num_heads, 0, -1):
        if num_heads % cand or (cand * D) % 128:
            continue
        blk_c = cand * D
        fp = 4 * (2 * tq * blk_c + 2 * S * blk_c) + 8 * tq * S
        if fp <= vmem_budget:
            hb = cand
            break
    if hb is None:                                  # fallback: smallest 128-lane group
        hb = num_heads
        for cand in range(1, num_heads + 1):
            if num_heads % cand == 0 and (cand * D) % 128 == 0:
                hb = cand
                break
    blk = hb * D
    n_groups = num_heads // hb
    n_q = S // tq

    # Smallest per-store head chunk that is still >=128 lanes.
    ch = hb
    for cand in range(1, hb + 1):
        if hb % cand == 0 and (cand * D) % 128 == 0:
            ch = cand
            break

    q_spec = pl.BlockSpec((1, tq, blk), lambda b, g, qi: (b, qi, g))
    k_spec = pl.BlockSpec((1, S, blk), lambda b, g, qi: (b, 0, n_groups + g))
    v_spec = pl.BlockSpec((1, S, blk), lambda b, g, qi: (b, 0, 2 * n_groups + g))
    m_spec = pl.BlockSpec((1, 1, S), lambda b, g, qi: (b, 0, 0))
    o_spec = pl.BlockSpec((1, tq, blk), lambda b, g, qi: (b, qi, g))

    # TODO(synk): add flash-style online-softmax tiling over the key axis for
    # S >= ~1024 (v7x 64 MiB VMEM); single-pass softmax kept for short S.
    return pl.pallas_call(
        functools.partial(_attention_kernel, heads_per_block=hb,
                          head_dim=D, chunk_heads=ch),
        out_shape=jax.ShapeDtypeStruct((B, S, H), out_dtype),
        grid=(B, n_groups, n_q),
        in_specs=[q_spec, k_spec, v_spec, m_spec],
        out_specs=o_spec,
        compiler_params=pltpu.CompilerParams(
            dimension_semantics=("parallel", "parallel", "parallel"),
            vmem_limit_bytes=_VMEM_LIMIT),
    )(qkv, qkv, qkv, mask_bias)


# ----------------------------------------------------------------------------
# Dual head: cat([s, t, s*t, |s-t|]) @ W + b   (W lane-padded to 128 outputs)
# ----------------------------------------------------------------------------
def _dual_head_kernel(s_ref, t_ref, w_ref, b_ref, o_ref):
    s = s_ref[...].astype(jnp.float32)
    t = t_ref[...].astype(jnp.float32)
    feats = jnp.concatenate([s, t, s * t, jnp.abs(s - t)], axis=-1)
    o_ref[...] = (jnp.dot(feats, w_ref[...],
                          preferred_element_type=jnp.float32) + b_ref[...])


def dual_head(s_pooled, t_pooled, w_pad, b_pad, *, n_out):
    """w_pad: (4H, 128) zero-padded classifier weight; returns (B, n_out)."""
    B, H = s_pooled.shape
    Np = w_pad.shape[1]
    out = pl.pallas_call(
        _dual_head_kernel,
        out_shape=jax.ShapeDtypeStruct((B, Np), jnp.float32),
    )(s_pooled, t_pooled, w_pad, b_pad.reshape(1, Np))
    return out[:, :n_out]                            # slice off lane padding


# ----------------------------------------------------------------------------
# NEZHA-like encoder (stand-in backbone) built from the kernels above
# ----------------------------------------------------------------------------
def encoder_layer(x, p, mask_bias, num_heads):
    B, S, H = x.shape
    x2 = x.reshape(B * S, H)                                  # bf16

    # Fused QKV projection: single (H, 3H) matmul, one read of x2.
    qkv = fused_linear(x2, p["w_qkv"], p["b_qkv"])            # (B*S, 3H) bf16
    ctx = attention(qkv.reshape(B, S, 3 * H), mask_bias, num_heads=num_heads)
    ctx2 = ctx.reshape(B * S, H)

    # Output projection with fused bias + residual + LayerNorm epilogue.
    x_attn = fused_linear(ctx2, p["wo"], p["bo"],
                          residual=x2, ln_gamma=p["ln1_g"], ln_beta=p["ln1_b"])

    ffn = fused_linear(x_attn, p["w1"], p["b1"], activation="gelu")
    out = fused_linear(ffn, p["w2"], p["b2"],
                       residual=x_attn, ln_gamma=p["ln2_g"], ln_beta=p["ln2_b"])
    return out.reshape(B, S, H)


def nezha_encode(input_ids, params, num_heads):
    """Returns the pooled embedding (== nezha_model(...)[1])."""
    B, S = input_ids.shape
    H = params["word_emb"].shape[-1]

    # attention_mask = torch.ne(input_ids, 0) -> additive bias, one copy per
    # batch row (NOT broadcast per head).
    mask = (input_ids != 0)
    bias = jnp.where(mask, 0.0, -1e4).astype(jnp.float32)[:, None, :]  # (B,1,S)

    # Embedding gather stays in plain-JAX glue (bf16 tables -> bf16 activations).
    emb = params["word_emb"][input_ids] + params["type_emb"][0][None, None, :]
    # TODO(synk): NEZHA's functional relative-position encoding (and external
    # pretrained weights/config) is omitted; token_type_ids hard-coded to 0.
    x = layernorm(emb.reshape(B * S, H), params["emb_ln_g"], params["emb_ln_b"])
    x = x.reshape(B, S, H)

    for layer in params["layers"]:
        x = encoder_layer(x, layer, bias, num_heads)

    first = x[:, 0, :]                                        # (B, H) bf16
    pooled = fused_linear(first, params["pooler_w"], params["pooler_b"],
                          activation="tanh", out_dtype=jnp.float32)
    return pooled


def dual_model_forward(source_input_ids, target_input_ids, params, num_heads):
    s_pooled = nezha_encode(source_input_ids, params, num_heads)
    t_pooled = nezha_encode(target_input_ids, params, num_heads)
    # dropout defined in __init__ is never applied in forward -> identity
    logits = dual_head(s_pooled, t_pooled, params["cls_w"], params["cls_b"],
                       n_out=2)
    return None, logits


# ----------------------------------------------------------------------------
# Deterministic parameter construction (weights stored bf16 once, here)
# ----------------------------------------------------------------------------
def init_params(key, vocab, hidden, intermediate, num_layers, num_heads):
    def nrm(k, shape):
        return 0.02 * jax.random.normal(k, shape, jnp.float32)

    head_dim = hidden // num_heads
    scale = 1.0 / math.sqrt(head_dim)

    keys = jax.random.split(key, 4 + num_layers)
    cls_w = nrm(keys[3], (4 * hidden, 2))              # nn.Linear(hidden*4, 2), transposed
    cls_w_pad = jnp.zeros((4 * hidden, 128), jnp.float32).at[:, :2].set(cls_w)
    cls_b_pad = jnp.zeros((128,), jnp.float32)

    params = {
        "word_emb": nrm(keys[0], (vocab, hidden)).astype(jnp.bfloat16),
        "type_emb": nrm(keys[1], (2, hidden)).astype(jnp.bfloat16),
        "emb_ln_g": jnp.ones((hidden,), jnp.float32),
        "emb_ln_b": jnp.zeros((hidden,), jnp.float32),
        "pooler_w": nrm(keys[2], (hidden, hidden)).astype(jnp.bfloat16),
        "pooler_b": jnp.zeros((hidden,), jnp.float32),
        "cls_w": cls_w_pad,                            # lane-padded to 128 outputs
        "cls_b": cls_b_pad,
        "layers": [],
    }
    for li in range(num_layers):
        lk = jax.random.split(keys[4 + li], 6)
        wq = nrm(lk[0], (hidden, hidden))
        wk = nrm(lk[1], (hidden, hidden))
        wv = nrm(lk[2], (hidden, hidden))
        bq = jnp.zeros((hidden,), jnp.float32)
        bk = jnp.zeros((hidden,), jnp.float32)
        bv = jnp.zeros((hidden,), jnp.float32)
        params["layers"].append({
            # 1/sqrt(head_dim) folded into the query projection (weight + bias).
            "w_qkv": jnp.concatenate([wq * scale, wk, wv], axis=1).astype(jnp.bfloat16),
            "b_qkv": jnp.concatenate([bq * scale, bk, bv], axis=0),
            "wo": nrm(lk[3], (hidden, hidden)).astype(jnp.bfloat16),
            "bo": jnp.zeros((hidden,), jnp.float32),
            "ln1_g": jnp.ones((hidden,), jnp.float32),
            "ln1_b": jnp.zeros((hidden,), jnp.float32),
            "w1": nrm(lk[4], (hidden, intermediate)).astype(jnp.bfloat16),
            "b1": jnp.zeros((intermediate,), jnp.float32),
            "w2": nrm(lk[5], (intermediate, hidden)).astype(jnp.bfloat16),
            "b2": jnp.zeros((hidden,), jnp.float32),
            "ln2_g": jnp.ones((hidden,), jnp.float32),
            "ln2_b": jnp.zeros((hidden,), jnp.float32),
        })
    return params


if __name__ == "__main__":
    # Small synthetic config (original NEZHA: hidden=768, 12 layers, 12 heads)
    BATCH, SEQ = 2, 8
    VOCAB, HIDDEN, INTER = 32, 128, 256
    NUM_LAYERS, NUM_HEADS = 2, 4

    key = jax.random.PRNGKey(0)
    kp, ks, kt = jax.random.split(key, 3)
    params = init_params(kp, VOCAB, HIDDEN, INTER, NUM_LAYERS, NUM_HEADS)

    source_ids = jax.random.randint(ks, (BATCH, SEQ), 0, VOCAB, jnp.int32)
    target_ids = jax.random.randint(kt, (BATCH, SEQ), 0, VOCAB, jnp.int32)

    fwd = jax.jit(functools.partial(dual_model_forward, num_heads=NUM_HEADS))
    _, logits = fwd(source_ids, target_ids, params)
    logits = jax.block_until_ready(logits)

    assert logits.shape == (BATCH, 2)
    assert bool(jnp.all(jnp.isfinite(logits)))
    print("KERNEL_OK")
</pallas_src>

<mosaic_0001>
module attributes {stable_mosaic.version = 11 : i64} {
  func.func @_layernorm_kernel(%arg0: i32, %arg1: memref<16x128xbf16, #tpu.memory_space<vmem>>, %arg2: memref<1x128xf32, #tpu.memory_space<vmem>>, %arg3: memref<1x128xf32, #tpu.memory_space<vmem>>, %arg4: memref<16x128xbf16, #tpu.memory_space<vmem>>) attributes {dimension_semantics = [#tpu.dimension_semantics<parallel>], iteration_bounds = array<i64: 1>, scalar_prefetch = 0 : i64, scratch_operands = 0 : i64, tpu.core_type = #tpu.core_type<tc>, window_params = [{transform_indices = @transform_0, window_bounds = array<i64: 16, 128>}, {pipeline_mode = #tpu.pipeline_mode<synchronous>, transform_indices = @transform_1, window_bounds = array<i64: 1, 128>}, {pipeline_mode = #tpu.pipeline_mode<synchronous>, transform_indices = @transform_2, window_bounds = array<i64: 1, 128>}, {transform_indices = @transform_3, window_bounds = array<i64: 16, 128>}]} {
    %c0 = arith.constant 0 : index
    %c0_0 = arith.constant 0 : index
    %0 = vector.load %arg1[%c0, %c0_0] : memref<16x128xbf16, #tpu.memory_space<vmem>>, vector<16x128xbf16>
    %1 = arith.extf %0 : vector<16x128xbf16> to vector<16x128xf32>
    %cst = arith.constant dense<0.000000e+00> : vector<16xf32>
    %2 = vector.multi_reduction <add>, %1, %cst [1] : vector<16x128xf32> to vector<16xf32>
    %3 = vector.shape_cast %2 : vector<16xf32> to vector<16x1xf32>
    %cst_1 = arith.constant 1.280000e+02 : f32
    %4 = vector.broadcast %cst_1 : f32 to vector<16x1xf32>
    %5 = arith.divf %3, %4 : vector<16x1xf32>
    %6 = vector.broadcast %5 : vector<16x1xf32> to vector<16x128xf32>
    %7 = arith.subf %1, %6 : vector<16x128xf32>
    %8 = arith.mulf %7, %7 : vector<16x128xf32>
    %cst_2 = arith.constant dense<0.000000e+00> : vector<16xf32>
    %9 = vector.multi_reduction <add>, %8, %cst_2 [1] : vector<16x128xf32> to vector<16xf32>
    %10 = vector.shape_cast %9 : vector<16xf32> to vector<16x1xf32>
    %cst_3 = arith.constant 1.280000e+02 : f32
    %11 = vector.broadcast %cst_3 : f32 to vector<16x1xf32>
    %12 = arith.divf %10, %11 : vector<16x1xf32>
    %13 = vector.broadcast %5 : vector<16x1xf32> to vector<16x128xf32>
    %14 = arith.subf %1, %13 : vector<16x128xf32>
    %cst_4 = arith.constant 9.99999996E-13 : f32
    %15 = vector.broadcast %cst_4 : f32 to vector<16x1xf32>
    %16 = arith.addf %12, %15 : vector<16x1xf32>
    %17 = math.rsqrt %16 : vector<16x1xf32>
    %18 = vector.broadcast %17 : vector<16x1xf32> to vector<16x128xf32>
    %19 = arith.mulf %14, %18 : vector<16x128xf32>
    %c0_5 = arith.constant 0 : index
    %c0_6 = arith.constant 0 : index
    %20 = vector.load %arg2[%c0_5, %c0_6] : memref<1x128xf32, #tpu.memory_space<vmem>>, vector<1x128xf32>
    %21 = vector.broadcast %20 : vector<1x128xf32> to vector<16x128xf32>
    %22 = arith.mulf %19, %21 : vector<16x128xf32>
    %c0_7 = arith.constant 0 : index
    %c0_8 = arith.constant 0 : index
    %23 = vector.load %arg3[%c0_7, %c0_8] : memref<1x128xf32, #tpu.memory_space<vmem>>, vector<1x128xf32>
    %24 = vector.broadcast %23 : vector<1x128xf32> to vector<16x128xf32>
    %25 = arith.addf %22, %24 : vector<16x128xf32>
    %26 = arith.truncf %25 : vector<16x128xf32> to vector<16x128xbf16>
    %c0_9 = arith.constant 0 : index
    %c0_10 = arith.constant 0 : index
    %27 = vector.load %arg4[%c0_9, %c0_10] : memref<16x128xbf16, #tpu.memory_space<vmem>>, vector<16x128xbf16>
    tpu.vector_store %arg4[%c0_9, %c0_10], %26 {strides = array<i32>} : memref<16x128xbf16, #tpu.memory_space<vmem>>, vector<16x128xbf16>,
    return
  }
  func.func @transform_0(%arg0: i32) -> (i32, i32) {
    %c0_i32 = arith.constant 0 : i32
    %c0_i32_0 = arith.constant 0 : i32
    return %arg0, %c0_i32 : i32, i32
  }
  func.func @transform_1(%arg0: i32) -> (i32, i32) {
    %c0_i32 = arith.constant 0 : i32
    %c0_i32_0 = arith.constant 0 : i32
    %c0_i32_1 = arith.constant 0 : i32
    return %c0_i32, %c0_i32_0 : i32, i32
  }
  func.func @transform_2(%arg0: i32) -> (i32, i32) {
    %c0_i32 = arith.constant 0 : i32
    %c0_i32_0 = arith.constant 0 : i32
    %c0_i32_1 = arith.constant 0 : i32
    return %c0_i32, %c0_i32_0 : i32, i32
  }
  func.func @transform_3(%arg0: i32) -> (i32, i32) {
    %c0_i32 = arith.constant 0 : i32
    %c0_i32_0 = arith.constant 0 : i32
    return %arg0, %c0_i32 : i32, i32
  }
}

module attributes {stable_mosaic.version = 11 : i64} {
  func.func @_linear_kernel(%arg0: i32, %arg1: i32, %arg2: i32, %arg3: memref<16x128xbf16, #tpu.memory_space<vmem>>, %arg4: memref<128x384xbf16, #tpu.memory_space<vmem>>, %arg5: memref<1x384xf32, #tpu.memory_space<vmem>>, %arg6: memref<16x384xbf16, #tpu.memory_space<vmem>>, %arg7: memref<16x384xf32, #tpu.memory_space<vmem>>) attributes {dimension_semantics = [#tpu.dimension_semantics<parallel>, #tpu.dimension_semantics<parallel>, #tpu.dimension_semantics<arbitrary>], iteration_bounds = array<i64: 1, 1, 1>, scalar_prefetch = 0 : i64, scratch_operands = 1 : i64, tpu.core_type = #tpu.core_type<tc>, window_params = [{transform_indices = @transform_0, window_bounds = array<i64: 16, 128>}, {transform_indices = @transform_1, window_bounds = array<i64: 128, 384>}, {transform_indices = @transform_2, window_bounds = array<i64: 1, 384>}, {transform_indices = @transform_3, window_bounds = array<i64: 16, 384>}]} {
    %c0_i32 = arith.constant 0 : i32
    %0 = arith.cmpi eq, %arg2, %c0_i32 : i32
    %1 = arith.extui %0 : i1 to i32
    %c0_i32_0 = arith.constant 0 : i32
    %2 = arith.cmpi ne, %1, %c0_i32_0 : i32
    scf.if %2 {
      %cst_10 = arith.constant 0.000000e+00 : f32
      %12 = vector.broadcast %cst_10 : f32 to vector<16x384xf32>
      %c0_11 = arith.constant 0 : index
      %c0_12 = arith.constant 0 : index
      %13 = vector.load %arg7[%c0_11, %c0_12] : memref<16x384xf32, #tpu.memory_space<vmem>>, vector<16x384xf32>
      tpu.vector_store %arg7[%c0_11, %c0_12], %12 {strides = array<i32>} : memref<16x384xf32, #tpu.memory_space<vmem>>, vector<16x384xf32>,
    } else {
    }
    %c0 = arith.constant 0 : index
    %c0_1 = arith.constant 0 : index
    %3 = vector.load %arg7[%c0, %c0_1] : memref<16x384xf32, #tpu.memory_space<vmem>>, vector<16x384xf32>
    %c0_2 = arith.constant 0 : index
    %c0_3 = arith.constant 0 : index
    %4 = vector.load %arg3[%c0_2, %c0_3] : memref<16x128xbf16, #tpu.memory_space<vmem>>, vector<16x128xbf16>
    %c0_4 = arith.constant 0 : index
    %c0_5 = arith.constant 0 : index
    %5 = vector.load %arg4[%c0_4, %c0_5] : memref<128x384xbf16, #tpu.memory_space<vmem>>, vector<128x384xbf16>
    %cst = arith.constant dense<0.000000e+00> : vector<16x384xf32>
    %6 = tpu.matmul %4, %5, %cst {dimension_numbers = #tpu.dot_dimension_numbers<[1], [0], [0], [1], [0, 0, 1, 1], [], []>} : vector<16x128xbf16>, vector<128x384xbf16>, vector<16x384xf32> -> vector<16x384xf32>
    %7 = arith.addf %3, %6 : vector<16x384xf32>
    %c0_6 = arith.constant 0 : index
    %c0_7 = arith.constant 0 : index
    %8 = vector.load %arg7[%c0_6, %c0_7] : memref<16x384xf32, #tpu.memory_space<vmem>>, vector<16x384xf32>
    tpu.vector_store %arg7[%c0_6, %c0_7], %7 {strides = array<i32>} : memref<16x384xf32, #tpu.memory_space<vmem>>, vector<16x384xf32>,
    %c0_i32_8 = arith.constant 0 : i32
    %9 = arith.cmpi eq, %arg2, %c0_i32_8 : i32
    %10 = arith.extui %9 : i1 to i32
    %c0_i32_9 = arith.constant 0 : i32
    %11 = arith.cmpi ne, %10, %c0_i32_9 : i32
    scf.if %11 {
      %c0_10 = arith.constant 0 : index
      %c0_11 = arith.constant 0 : index
      %12 = vector.load %arg7[%c0_10, %c0_11] : memref<16x384xf32, #tpu.memory_space<vmem>>, vector<16x384xf32>
      %c0_12 = arith.constant 0 : index
      %c0_13 = arith.constant 0 : index
      %13 = vector.load %arg5[%c0_12, %c0_13] : memref<1x384xf32, #tpu.memory_space<vmem>>, vector<1x384xf32>
      %14 = vector.broadcast %13 : vector<1x384xf32> to vector<16x384xf32>
      %15 = arith.addf %12, %14 : vector<16x384xf32>
      %16 = arith.truncf %15 : vector<16x384xf32> to vector<16x384xbf16>
      %c0_14 = arith.constant 0 : index
      %c0_15 = arith.constant 0 : index
      %17 = vector.load %arg6[%c0_14, %c0_15] : memref<16x384xbf16, #tpu.memory_space<vmem>>, vector<16x384xbf16>
      tpu.vector_store %arg6[%c0_14, %c0_15], %16 {strides = array<i32>} : memref<16x384xbf16, #tpu.memory_space<vmem>>, vector<16x384xbf16>,
    } else {
    }
    return
  }
  func.func @transform_0(%arg0: i32, %arg1: i32, %arg2: i32) -> (i32, i32) {
    %c0_i32 = arith.constant 0 : i32
    return %arg0, %arg2 : i32, i32
  }
  func.func @transform_1(%arg0: i32, %arg1: i32, %arg2: i32) -> (i32, i32) {
    %c0_i32 = arith.constant 0 : i32
    return %arg2, %arg1 : i32, i32
  }
  func.func @transform_2(%arg0: i32, %arg1: i32, %arg2: i32) -> (i32, i32) {
    %c0_i32 = arith.constant 0 : i32
    %c0_i32_0 = arith.constant 0 : i32
    return %c0_i32, %arg1 : i32, i32
  }
  func.func @transform_3(%arg0: i32, %arg1: i32, %arg2: i32) -> (i32, i32) {
    %c0_i32 = arith.constant 0 : i32
    return %arg0, %arg1 : i32, i32
  }
}

module attributes {stable_mosaic.version = 11 : i64} {
  func.func @_linear_addln_kernel(%arg0: i32, %arg1: i32, %arg2: i32, %arg3: memref<16x128xbf16, #tpu.memory_space<vmem>>, %arg4: memref<128x128xbf16, #tpu.memory_space<vmem>>, %arg5: memref<1x128xf32, #tpu.memory_space<vmem>>, %arg6: memref<16x128xbf16, #tpu.memory_space<vmem>>, %arg7: memref<1x128xf32, #tpu.memory_space<vmem>>, %arg8: memref<1x128xf32, #tpu.memory_space<vmem>>, %arg9: memref<16x128xbf16, #tpu.memory_space<vmem>>, %arg10: memref<16x128xf32, #tpu.memory_space<vmem>>) attributes {dimension_semantics = [#tpu.dimension_semantics<parallel>, #tpu.dimension_semantics<parallel>, #tpu.dimension_semantics<arbitrary>], iteration_bounds = array<i64: 1, 1, 1>, scalar_prefetch = 0 : i64, scratch_operands = 1 : i64, tpu.core_type = #tpu.core_type<tc>, window_params = [{transform_indices = @transform_0, window_bounds = array<i64: 16, 128>}, {transform_indices = @transform_1, window_bounds = array<i64: 128, 128>}, {transform_indices = @transform_2, window_bounds = array<i64: 1, 128>}, {transform_indices = @transform_3, window_bounds = array<i64: 16, 128>}, {transform_indices = @transform_4, window_bounds = array<i64: 1, 128>}, {transform_indices = @transform_5, window_bounds = array<i64: 1, 128>}, {transform_indices = @transform_6, window_bounds = array<i64: 16, 128>}]} {
    %c0_i32 = arith.constant 0 : i32
    %0 = arith.cmpi eq, %arg2, %c0_i32 : i32
    %1 = arith.extui %0 : i1 to i32
    %c0_i32_0 = arith.constant 0 : i32
    %2 = arith.cmpi ne, %1, %c0_i32_0 : i32
    scf.if %2 {
      %cst_10 = arith.constant 0.000000e+00 : f32
      %12 = vector.broadcast %cst_10 : f32 to vector<16x128xf32>
      %c0_11 = arith.constant 0 : index
      %c0_12 = arith.constant 0 : index
      %13 = vector.load %arg10[%c0_11, %c0_12] : memref<16x128xf32, #tpu.memory_space<vmem>>, vector<16x128xf32>
      tpu.vector_store %arg10[%c0_11, %c0_12], %12 {strides = array<i32>} : memref<16x128xf32, #tpu.memory_space<vmem>>, vector<16x128xf32>,
    } else {
    }
    %c0 = arith.constant 0 : index
    %c0_1 = arith.constant 0 : index
    %3 = vector.load %arg10[%c0, %c0_1] : memref<16x128xf32, #tpu.memory_space<vmem>>, vector<16x128xf32>
    %c0_2 = arith.constant 0 : index
    %c0_3 = arith.constant 0 : index
    %4 = vector.load %arg3[%c0_2, %c0_3] : memref<16x128xbf16, #tpu.memory_space<vmem>>, vector<16x128xbf16>
    %c0_4 = arith.constant 0 : index
    %c0_5 = arith.constant 0 : index
    %5 = vector.load %arg4[%c0_4, %c0_5] : memref<128x128xbf16, #tpu.memory_space<vmem>>, vector<128x128xbf16>
    %cst = arith.constant dense<0.000000e+00> : vector<16x128xf32>
    %6 = tpu.matmul %4, %5, %cst {dimension_numbers = #tpu.dot_dimension_numbers<[1], [0], [0], [1], [0, 0, 1, 1], [], []>} : vector<16x128xbf16>, vector<128x128xbf16>, vector<16x128xf32> -> vector<16x128xf32>
    %7 = arith.addf %3, %6 : vector<16x128xf32>
    %c0_6 = arith.constant 0 : index
    %c0_7 = arith.constant 0 : index
    %8 = vector.load %arg10[%c0_6, %c0_7] : memref<16x128xf32, #tpu.memory_space<vmem>>, vector<16x128xf32>
    tpu.vector_store %arg10[%c0_6, %c0_7], %7 {strides = array<i32>} : memref<16x128xf32, #tpu.memory_space<vmem>>, vector<16x128xf32>,
    %c0_i32_8 = arith.constant 0 : i32
    %9 = arith.cmpi eq, %arg2, %c0_i32_8 : i32
    %10 = arith.extui %9 : i1 to i32
    %c0_i32_9 = arith.constant 0 : i32
    %11 = arith.cmpi ne, %10, %c0_i32_9 : i32
    scf.if %11 {
      %c0_10 = arith.constant 0 : index
      %c0_11 = arith.constant 0 : index
      %12 = vector.load %arg10[%c0_10, %c0_11] : memref<16x128xf32, #tpu.memory_space<vmem>>, vector<16x128xf32>
      %c0_12 = arith.constant 0 : index
      %c0_13 = arith.constant 0 : index
      %13 = vector.load %arg5[%c0_12, %c0_13] : memref<1x128xf32, #tpu.memory_space<vmem>>, vector<1x128xf32>
      %14 = vector.broadcast %13 : vector<1x128xf32> to vector<16x128xf32>
      %15 = arith.addf %12, %14 : vector<16x128xf32>
      %c0_14 = arith.constant 0 : index
      %c0_15 = arith.constant 0 : index
      %16 = vector.load %arg6[%c0_14, %c0_15] : memref<16x128xbf16, #tpu.memory_space<vmem>>, vector<16x128xbf16>
      %17 = arith.extf %16 : vector<16x128xbf16> to vector<16x128xf32>
      %18 = arith.addf %15, %17 : vector<16x128xf32>
      %cst_16 = arith.constant dense<0.000000e+00> : vector<16xf32>
      %19 = vector.multi_reduction <add>, %18, %cst_16 [1] : vector<16x128xf32> to vector<16xf32>
      %20 = vector.shape_cast %19 : vector<16xf32> to vector<16x1xf32>
      %cst_17 = arith.constant 1.280000e+02 : f32
      %21 = vector.broadcast %cst_17 : f32 to vector<16x1xf32>
      %22 = arith.divf %20, %21 : vector<16x1xf32>
      %23 = vector.broadcast %22 : vector<16x1xf32> to vector<16x128xf32>
      %24 = arith.subf %18, %23 : vector<16x128xf32>
      %25 = arith.mulf %24, %24 : vector<16x128xf32>
      %cst_18 = arith.constant dense<0.000000e+00> : vector<16xf32>
      %26 = vector.multi_reduction <add>, %25, %cst_18 [1] : vector<16x128xf32> to vector<16xf32>
      %27 = vector.shape_cast %26 : vector<16xf32> to vector<16x1xf32>
      %cst_19 = arith.constant 1.280000e+02 : f32
      %28 = vector.broadcast %cst_19 : f32 to vector<16x1xf32>
      %29 = arith.divf %27, %28 : vector<16x1xf32>
      %30 = vector.broadcast %22 : vector<16x1xf32> to vector<16x128xf32>
      %31 = arith.subf %18, %30 : vector<16x128xf32>
      %cst_20 = arith.constant 9.99999996E-13 : f32
      %32 = vector.broadcast %cst_20 : f32 to vector<16x1xf32>
      %33 = arith.addf %29, %32 : vector<16x1xf32>
      %34 = math.rsqrt %33 : vector<16x1xf32>
      %35 = vector.broadcast %34 : vector<16x1xf32> to vector<16x128xf32>
      %36 = arith.mulf %31, %35 : vector<16x128xf32>
      %c0_21 = arith.constant 0 : index
      %c0_22 = arith.constant 0 : index
      %37 = vector.load %arg7[%c0_21, %c0_22] : memref<1x128xf32, #tpu.memory_space<vmem>>, vector<1x128xf32>
      %38 = vector.broadcast %37 : vector<1x128xf32> to vector<16x128xf32>
      %39 = arith.mulf %36, %38 : vector<16x128xf32>
      %c0_23 = arith.constant 0 : index
      %c0_24 = arith.constant 0 : index
      %40 = vector.load %arg8[%c0_23, %c0_24] : memref<1x128xf32, #tpu.memory_space<vmem>>, vector<1x128xf32>
      %41 = vector.broadcast %40 : vector<1x128xf32> to vector<16x128xf32>
      %42 = arith.addf %39, %41 : vector<16x128xf32>
      %43 = arith.truncf %42 : vector<16x128xf32> to vector<16x128xbf16>
      %c0_25 = arith.constant 0 : index
      %c0_26 = arith.constant 0 : index
      %44 = vector.load %arg9[%c0_25, %c0_26] : memref<16x128xbf16, #tpu.memory_space<vmem>>, vector<16x128xbf16>
      tpu.vector_store %arg9[%c0_25, %c0_26], %43 {strides = array<i32>} : memref<16x128xbf16, #tpu.memory_space<vmem>>, vector<16x128xbf16>,
    } else {
    }
    return
  }
  func.func @transform_0(%arg0: i32, %arg1: i32, %arg2: i32) -> (i32, i32) {
    %c0_i32 = arith.constant 0 : i32
    return %arg0, %arg2 : i32, i32
  }
  func.func @transform_1(%arg0: i32, %arg1: i32, %arg2: i32) -> (i32, i32) {
    %c0_i32 = arith.constant 0 : i32
    return %arg2, %arg1 : i32, i32
  }
  func.func @transform_2(%arg0: i32, %arg1: i32, %arg2: i32) -> (i32, i32) {
    %c0_i32 = arith.constant 0 : i32
    %c0_i32_0 = arith.constant 0 : i32
    return %c0_i32, %arg1 : i32, i32
  }
  func.func @transform_3(%arg0: i32, %arg1: i32, %arg2: i32) -> (i32, i32) {
    %c0_i32 = arith.constant 0 : i32
    return %arg0, %arg1 : i32, i32
  }
  func.func @transform_4(%arg0: i32, %arg1: i32, %arg2: i32) -> (i32, i32) {
    %c0_i32 = arith.constant 0 : i32
    %c0_i32_0 = arith.constant 0 : i32
    return %c0_i32, %arg1 : i32, i32
  }
  func.func @transform_5(%arg0: i32, %arg1: i32, %arg2: i32) -> (i32, i32) {
    %c0_i32 = arith.constant 0 : i32
    %c0_i32_0 = arith.constant 0 : i32
    return %c0_i32, %arg1 : i32, i32
  }
  func.func @transform_6(%arg0: i32, %arg1: i32, %arg2: i32) -> (i32, i32) {
    %c0_i32 = arith.constant 0 : i32
    return %arg0, %arg1 : i32, i32
  }
}

module attributes {stable_mosaic.version = 11 : i64} {
  func.func @_attention_kernel(%arg0: i32, %arg1: i32, %arg2: i32, %arg3: memref<1x8x128xbf16, #tpu.memory_space<vmem>>, %arg4: memref<1x8x128xbf16, #tpu.memory_space<vmem>>, %arg5: memref<1x8x128xbf16, #tpu.memory_space<vmem>>, %arg6: memref<1x1x8xf32, #tpu.memory_space<vmem>>, %arg7: memref<1x8x128xbf16, #tpu.memory_space<vmem>>) attributes {dimension_semantics = [#tpu.dimension_semantics<parallel>, #tpu.dimension_semantics<parallel>, #tpu.dimension_semantics<parallel>], iteration_bounds = array<i64: 2, 1, 1>, scalar_prefetch = 0 : i64, scratch_operands = 0 : i64, tpu.core_type = #tpu.core_type<tc>, window_params = [{transform_indices = @transform_0, window_bounds = array<i64: 1, 8, 128>}, {transform_indices = @transform_1, window_bounds = array<i64: 1, 8, 128>}, {transform_indices = @transform_2, window_bounds = array<i64: 1, 8, 128>}, {transform_indices = @transform_3, window_bounds = array<i64: 1, 1, 8>}, {transform_indices = @transform_4, window_bounds = array<i64: 1, 8, 128>}]} {
    %c0 = arith.constant 0 : index
    %c0_0 = arith.constant 0 : index
    %c0_1 = arith.constant 0 : index
    %0 = vector.load %arg6[%c0, %c0_0, %c0_1] : memref<1x1x8xf32, #tpu.memory_space<vmem>>, vector<1x1x8xf32>
    %1 = vector.shape_cast %0 : vector<1x1x8xf32> to vector<1x8xf32>
    %c0_2 = arith.constant 0 : index
    %c0_3 = arith.constant 0 : index
    %c0_4 = arith.constant 0 : index
    %2 = vector.load %arg3[%c0_2, %c0_3, %c0_4] : memref<1x8x128xbf16, #tpu.memory_space<vmem>>, vector<1x8x128xbf16>
    %3 = vector.shape_cast %2 : vector<1x8x128xbf16> to vector<8x128xbf16>
    %c0_5 = arith.constant 0 : index
    %c0_6 = arith.constant 0 : index
    %c0_7 = arith.constant 0 : index
    %4 = vector.load %arg4[%c0_5, %c0_6, %c0_7] : memref<1x8x128xbf16, #tpu.memory_space<vmem>>, vector<1x8x128xbf16>
    %5 = vector.shape_cast %4 : vector<1x8x128xbf16> to vector<8x128xbf16>
    %c0_8 = arith.constant 0 : index
    %c0_9 = arith.constant 0 : index
    %c0_10 = arith.constant 0 : index
    %6 = vector.load %arg5[%c0_8, %c0_9, %c0_10] : memref<1x8x128xbf16, #tpu.memory_space<vmem>>, vector<1x8x128xbf16>
    %7 = vector.shape_cast %6 : vector<1x8x128xbf16> to vector<8x128xbf16>
    %8 = vector.extract_strided_slice %3 {offsets = [0, 0], sizes = [8, 32], strides = [1, 1]} : vector<8x128xbf16> to vector<8x32xbf16>
    %9 = vector.extract_strided_slice %5 {offsets = [0, 0], sizes = [8, 32], strides = [1, 1]} : vector<8x128xbf16> to vector<8x32xbf16>
    %10 = vector.extract_strided_slice %7 {offsets = [0, 0], sizes = [8, 32], strides = [1, 1]} : vector<8x128xbf16> to vector<8x32xbf16>
    %cst = arith.constant dense<0.000000e+00> : vector<8x8xf32>
    %11 = tpu.matmul %8, %9, %cst {dimension_numbers = #tpu.dot_dimension_numbers<[1], [1], [0], [0], [0, 0, 1, 0], [], []>} : vector<8x32xbf16>, vector<8x32xbf16>, vector<8x8xf32> -> vector<8x8xf32>
    %12 = vector.broadcast %1 : vector<1x8xf32> to vector<8x8xf32>
    %13 = arith.addf %11, %12 : vector<8x8xf32>
    %cst_11 = arith.constant dense<0xFF800000> : vector<8xf32>
    %14 = vector.multi_reduction <maximumf>, %13, %cst_11 [1] : vector<8x8xf32> to vector<8xf32>
    %15 = vector.shape_cast %14 : vector<8xf32> to vector<8x1xf32>
    %16 = vector.broadcast %15 : vector<8x1xf32> to vector<8x8xf32>
    %17 = arith.subf %13, %16 : vector<8x8xf32>
    %18 = math.exp %17 : vector<8x8xf32>
    %cst_12 = arith.constant dense<0.000000e+00> : vector<8xf32>
    %19 = vector.multi_reduction <add>, %18, %cst_12 [1] : vector<8x8xf32> to vector<8xf32>
    %20 = vector.shape_cast %19 : vector<8xf32> to vector<8x1xf32>
    %21 = tpu.reciprocal %20 {approx = true} : vector<8x1xf32> -> vector<8x1xf32>
    %22 = vector.broadcast %21 : vector<8x1xf32> to vector<8x8xf32>
    %23 = arith.mulf %18, %22 : vector<8x8xf32>
    %24 = arith.truncf %23 : vector<8x8xf32> to vector<8x8xbf16>
    %cst_13 = arith.constant dense<0.000000e+00> : vector<8x32xf32>
    %25 = tpu.matmul %24, %10, %cst_13 {dimension_numbers = #tpu.dot_dimension_numbers<[1], [0], [0], [1], [0, 0, 1, 1], [], []>} : vector<8x8xbf16>, vector<8x32xbf16>, vector<8x32xf32> -> vector<8x32xf32>
    %26 = vector.extract_strided_slice %3 {offsets = [0, 32], sizes = [8, 32], strides = [1, 1]} : vector<8x128xbf16> to vector<8x32xbf16>
    %27 = vector.extract_strided_slice %5 {offsets = [0, 32], sizes = [8, 32], strides = [1, 1]} : vector<8x128xbf16> to vector<8x32xbf16>
    %28 = vector.extract_strided_slice %7 {offsets = [0, 32], sizes = [8, 32], strides = [1, 1]} : vector<8x128xbf16> to vector<8x32xbf16>
    %cst_14 = arith.constant dense<0.000000e+00> : vector<8x8xf32>
    %29 = tpu.matmul %26, %27, %cst_14 {dimension_numbers = #tpu.dot_dimension_numbers<[1], [1], [0], [0], [0, 0, 1, 0], [], []>} : vector<8x32xbf16>, vector<8x32xbf16>, vector<8x8xf32> -> vector<8x8xf32>
    %30 = vector.broadcast %1 : vector<1x8xf32> to vector<8x8xf32>
    %31 = arith.addf %29, %30 : vector<8x8xf32>
    %cst_15 = arith.constant dense<0xFF800000> : vector<8xf32>
    %32 = vector.multi_reduction <maximumf>, %31, %cst_15 [1] : vector<8x8xf32> to vector<8xf32>
    %33 = vector.shape_cast %32 : vector<8xf32> to vector<8x1xf32>
    %34 = vector.broadcast %33 : vector<8x1xf32> to vector<8x8xf32>
    %35 = arith.subf %31, %34 : vector<8x8xf32>
    %36 = math.exp %35 : vector<8x8xf32>
    %cst_16 = arith.constant dense<0.000000e+00> : vector<8xf32>
    %37 = vector.multi_reduction <add>, %36, %cst_16 [1] : vector<8x8xf32> to vector<8xf32>
    %38 = vector.shape_cast %37 : vector<8xf32> to vector<8x1xf32>
    %39 = tpu.reciprocal %38 {approx = true} : vector<8x1xf32> -> vector<8x1xf32>
    %40 = vector.broadcast %39 : vector<8x1xf32> to vector<8x8xf32>
    %41 = arith.mulf %36, %40 : vector<8x8xf32>
    %42 = arith.truncf %41 : vector<8x8xf32> to vector<8x8xbf16>
    %cst_17 = arith.constant dense<0.000000e+00> : vector<8x32xf32>
    %43 = tpu.matmul %42, %28, %cst_17 {dimension_numbers = #tpu.dot_dimension_numbers<[1], [0], [0], [1], [0, 0, 1, 1], [], []>} : vector<8x8xbf16>, vector<8x32xbf16>, vector<8x32xf32> -> vector<8x32xf32>
    %44 = vector.extract_strided_slice %3 {offsets = [0, 64], sizes = [8, 32], strides = [1, 1]} : vector<8x128xbf16> to vector<8x32xbf16>
    %45 = vector.extract_strided_slice %5 {offsets = [0, 64], sizes = [8, 32], strides = [1, 1]} : vector<8x128xbf16> to vector<8x32xbf16>
    %46 = vector.extract_strided_slice %7 {offsets = [0, 64], sizes = [8, 32], strides = [1, 1]} : vector<8x128xbf16> to vector<8x32xbf16>
    %cst_18 = arith.constant dense<0.000000e+00> : vector<8x8xf32>
    %47 = tpu.matmul %44, %45, %cst_18 {dimension_numbers = #tpu.dot_dimension_numbers<[1], [1], [0], [0], [0, 0, 1, 0], [], []>} : vector<8x32xbf16>, vector<8x32xbf16>, vector<8x8xf32> -> vector<8x8xf32>
    %48 = vector.broadcast %1 : vector<1x8xf32> to vector<8x8xf32>
    %49 = arith.addf %47, %48 : vector<8x8xf32>
    %cst_19 = arith.constant dense<0xFF800000> : vector<8xf32>
    %50 = vector.multi_reduction <maximumf>, %49, %cst_19 [1] : vector<8x8xf32> to vector<8xf32>
    %51 = vector.shape_cast %50 : vector<8xf32> to vector<8x1xf32>
    %52 = vector.broadcast %51 : vector<8x1xf32> to vector<8x8xf32>
    %53 = arith.subf %49, %52 : vector<8x8xf32>
    %54 = math.exp %53 : vector<8x8xf32>
    %cst_20 = arith.constant dense<0.000000e+00> : vector<8xf32>
    %55 = vector.multi_reduction <add>, %54, %cst_20 [1] : vector<8x8xf32> to vector<8xf32>
    %56 = vector.shape_cast %55 : vector<8xf32> to vector<8x1xf32>
    %57 = tpu.reciprocal %56 {approx = true} : vector<8x1xf32> -> vector<8x1xf32>
    %58 = vector.broadcast %57 : vector<8x1xf32> to vector<8x8xf32>
    %59 = arith.mulf %54, %58 : vector<8x8xf32>
    %60 = arith.truncf %59 : vector<8x8xf32> to vector<8x8xbf16>
    %cst_21 = arith.constant dense<0.000000e+00> : vector<8x32xf32>
    %61 = tpu.matmul %60, %46, %cst_21 {dimension_numbers = #tpu.dot_dimension_numbers<[1], [0], [0], [1], [0, 0, 1, 1], [], []>} : vector<8x8xbf16>, vector<8x32xbf16>, vector<8x32xf32> -> vector<8x32xf32>
    %62 = vector.extract_strided_slice %3 {offsets = [0, 96], sizes = [8, 32], strides = [1, 1]} : vector<8x128xbf16> to vector<8x32xbf16>
    %63 = vector.extract_strided_slice %5 {offsets = [0, 96], sizes = [8, 32], strides = [1, 1]} : vector<8x128xbf16> to vector<8x32xbf16>
    %64 = vector.extract_strided_slice %7 {offsets = [0, 96], sizes = [8, 32], strides = [1, 1]} : vector<8x128xbf16> to vector<8x32xbf16>
    %cst_22 = arith.constant dense<0.000000e+00> : vector<8x8xf32>
    %65 = tpu.matmul %62, %63, %cst_22 {dimension_numbers = #tpu.dot_dimension_numbers<[1], [1], [0], [0], [0, 0, 1, 0], [], []>} : vector<8x32xbf16>, vector<8x32xbf16>, vector<8x8xf32> -> vector<8x8xf32>
    %66 = vector.broadcast %1 : vector<1x8xf32> to vector<8x8xf32>
    %67 = arith.addf %65, %66 : vector<8x8xf32>
    %cst_23 = arith.constant dense<0xFF800000> : vector<8xf32>
    %68 = vector.multi_reduction <maximumf>, %67, %cst_23 [1] : vector<8x8xf32> to vector<8xf32>
    %69 = vector.shape_cast %68 : vector<8xf32> to vector<8x1xf32>
    %70 = vector.broadcast %69 : vector<8x1xf32> to vector<8x8xf32>
    %71 = arith.subf %67, %70 : vector<8x8xf32>
    %72 = math.exp %71 : vector<8x8xf32>
    %cst_24 = arith.constant dense<0.000000e+00> : vector<8xf32>
    %73 = vector.multi_reduction <add>, %72, %cst_24 [1] : vector<8x8xf32> to vector<8xf32>
    %74 = vector.shape_cast %73 : vector<8xf32> to vector<8x1xf32>
    %75 = tpu.reciprocal %74 {approx = true} : vector<8x1xf32> -> vector<8x1xf32>
    %76 = vector.broadcast %75 : vector<8x1xf32> to vector<8x8xf32>
    %77 = arith.mulf %72, %76 : vector<8x8xf32>
    %78 = arith.truncf %77 : vector<8x8xf32> to vector<8x8xbf16>
    %cst_25 = arith.constant dense<0.000000e+00> : vector<8x32xf32>
    %79 = tpu.matmul %78, %64, %cst_25 {dimension_numbers = #tpu.dot_dimension_numbers<[1], [0], [0], [1], [0, 0, 1, 1], [], []>} : vector<8x8xbf16>, vector<8x32xbf16>, vector<8x32xf32> -> vector<8x32xf32>
    %80 = tpu.concatenate %25, %43, %61, %79 in 1 : vector<8x32xf32>, vector<8x32xf32>, vector<8x32xf32>, vector<8x32xf32> -> vector<8x128xf32>
    %81 = arith.truncf %80 : vector<8x128xf32> to vector<8x128xbf16>
    %c0_26 = arith.constant 0 : index
    %c0_27 = arith.constant 0 : index
    %c0_28 = arith.constant 0 : index
    %82 = vector.load %arg7[%c0_26, %c0_27, %c0_28] : memref<1x8x128xbf16, #tpu.memory_space<vmem>>, vector<1x8x128xbf16>
    %83 = vector.shape_cast %82 : vector<1x8x128xbf16> to vector<8x128xbf16>
    %84 = vector.shape_cast %81 : vector<8x128xbf16> to vector<1x8x128xbf16>
    tpu.vector_store %arg7[%c0_26, %c0_27, %c0_28], %84 {strides = array<i32>} : memref<1x8x128xbf16, #tpu.memory_space<vmem>>, vector<1x8x128xbf16>,
    return
  }
  func.func @transform_0(%arg0: i32, %arg1: i32, %arg2: i32) -> (i32, i32, i32) {
    %c0_i32 = arith.constant 0 : i32
    return %arg0, %arg2, %arg1 : i32, i32, i32
  }
  func.func @transform_1(%arg0: i32, %arg1: i32, %arg2: i32) -> (i32, i32, i32) {
    %c1_i32 = arith.constant 1 : i32
    %0 = arith.addi %c1_i32, %arg1 : i32
    %c0_i32 = arith.constant 0 : i32
    %c0_i32_0 = arith.constant 0 : i32
    return %arg0, %c0_i32, %0 : i32, i32, i32
  }
  func.func @transform_2(%arg0: i32, %arg1: i32, %arg2: i32) -> (i32, i32, i32) {
    %c2_i32 = arith.constant 2 : i32
    %0 = arith.addi %c2_i32, %arg1 : i32
    %c0_i32 = arith.constant 0 : i32
    %c0_i32_0 = arith.constant 0 : i32
    return %arg0, %c0_i32, %0 : i32, i32, i32
  }
  func.func @transform_3(%arg0: i32, %arg1: i32, %arg2: i32) -> (i32, i32, i32) {
    %c0_i32 = arith.constant 0 : i32
    %c0_i32_0 = arith.constant 0 : i32
    %c0_i32_1 = arith.constant 0 : i32
    return %arg0, %c0_i32, %c0_i32_0 : i32, i32, i32
  }
  func.func @transform_4(%arg0: i32, %arg1: i32, %arg2: i32) -> (i32, i32, i32) {
    %c0_i32 = arith.constant 0 : i32
    return %arg0, %arg2, %arg1 : i32, i32, i32
  }
}

module attributes {stable_mosaic.version = 11 : i64} {
  func.func @_linear_kernel(%arg0: i32, %arg1: i32, %arg2: i32, %arg3: memref<16x128xbf16, #tpu.memory_space<vmem>>, %arg4: memref<128x256xbf16, #tpu.memory_space<vmem>>, %arg5: memref<1x256xf32, #tpu.memory_space<vmem>>, %arg6: memref<16x256xbf16, #tpu.memory_space<vmem>>, %arg7: memref<16x256xf32, #tpu.memory_space<vmem>>) attributes {dimension_semantics = [#tpu.dimension_semantics<parallel>, #tpu.dimension_semantics<parallel>, #tpu.dimension_semantics<arbitrary>], iteration_bounds = array<i64: 1, 1, 1>, scalar_prefetch = 0 : i64, scratch_operands = 1 : i64, tpu.core_type = #tpu.core_type<tc>, window_params = [{transform_indices = @transform_0, window_bounds = array<i64: 16, 128>}, {transform_indices = @transform_1, window_bounds = array<i64: 128, 256>}, {transform_indices = @transform_2, window_bounds = array<i64: 1, 256>}, {transform_indices = @transform_3, window_bounds = array<i64: 16, 256>}]} {
    %c0_i32 = arith.constant 0 : i32
    %0 = arith.cmpi eq, %arg2, %c0_i32 : i32
    %1 = arith.extui %0 : i1 to i32
    %c0_i32_0 = arith.constant 0 : i32
    %2 = arith.cmpi ne, %1, %c0_i32_0 : i32
    scf.if %2 {
      %cst_10 = arith.constant 0.000000e+00 : f32
      %12 = vector.broadcast %cst_10 : f32 to vector<16x256xf32>
      %c0_11 = arith.constant 0 : index
      %c0_12 = arith.constant 0 : index
      %13 = vector.load %arg7[%c0_11, %c0_12] : memref<16x256xf32, #tpu.memory_space<vmem>>, vector<16x256xf32>
      tpu.vector_store %arg7[%c0_11, %c0_12], %12 {strides = array<i32>} : memref<16x256xf32, #tpu.memory_space<vmem>>, vector<16x256xf32>,
    } else {
    }
    %c0 = arith.constant 0 : index
    %c0_1 = arith.constant 0 : index
    %3 = vector.load %arg7[%c0, %c0_1] : memref<16x256xf32, #tpu.memory_space<vmem>>, vector<16x256xf32>
    %c0_2 = arith.constant 0 : index
    %c0_3 = arith.constant 0 : index
    %4 = vector.load %arg3[%c0_2, %c0_3] : memref<16x128xbf16, #tpu.memory_space<vmem>>, vector<16x128xbf16>
    %c0_4 = arith.constant 0 : index
    %c0_5 = arith.constant 0 : index
    %5 = vector.load %arg4[%c0_4, %c0_5] : memref<128x256xbf16, #tpu.memory_space<vmem>>, vector<128x256xbf16>
    %cst = arith.constant dense<0.000000e+00> : vector<16x256xf32>
    %6 = tpu.matmul %4, %5, %cst {dimension_numbers = #tpu.dot_dimension_numbers<[1], [0], [0], [1], [0, 0, 1, 1], [], []>} : vector<16x128xbf16>, vector<128x256xbf16>, vector<16x256xf32> -> vector<16x256xf32>
    %7 = arith.addf %3, %6 : vector<16x256xf32>
    %c0_6 = arith.constant 0 : index
    %c0_7 = arith.constant 0 : index
    %8 = vector.load %arg7[%c0_6, %c0_7] : memref<16x256xf32, #tpu.memory_space<vmem>>, vector<16x256xf32>
    tpu.vector_store %arg7[%c0_6, %c0_7], %7 {strides = array<i32>} : memref<16x256xf32, #tpu.memory_space<vmem>>, vector<16x256xf32>,
    %c0_i32_8 = arith.constant 0 : i32
    %9 = arith.cmpi eq, %arg2, %c0_i32_8 : i32
    %10 = arith.extui %9 : i1 to i32
    %c0_i32_9 = arith.constant 0 : i32
    %11 = arith.cmpi ne, %10, %c0_i32_9 : i32
    scf.if %11 {
      %c0_10 = arith.constant 0 : index
      %c0_11 = arith.constant 0 : index
      %12 = vector.load %arg7[%c0_10, %c0_11] : memref<16x256xf32, #tpu.memory_space<vmem>>, vector<16x256xf32>
      %c0_12 = arith.constant 0 : index
      %c0_13 = arith.constant 0 : index
      %13 = vector.load %arg5[%c0_12, %c0_13] : memref<1x256xf32, #tpu.memory_space<vmem>>, vector<1x256xf32>
      %14 = vector.broadcast %13 : vector<1x256xf32> to vector<16x256xf32>
      %15 = arith.addf %12, %14 : vector<16x256xf32>
      %16 = arith.mulf %15, %15 : vector<16x256xf32>
      %17 = arith.mulf %15, %16 : vector<16x256xf32>
      %cst_14 = arith.constant 4.471500e-02 : f32
      %18 = vector.broadcast %cst_14 : f32 to vector<16x256xf32>
      %19 = arith.mulf %18, %17 : vector<16x256xf32>
      %20 = arith.addf %15, %19 : vector<16x256xf32>
      %cst_15 = arith.constant 0.797884583 : f32
      %21 = vector.broadcast %cst_15 : f32 to vector<16x256xf32>
      %22 = arith.mulf %21, %20 : vector<16x256xf32>
      %23 = math.tanh %22 : vector<16x256xf32>
      %cst_16 = arith.constant 1.000000e+00 : f32
      %24 = vector.broadcast %cst_16 : f32 to vector<16x256xf32>
      %25 = arith.addf %24, %23 : vector<16x256xf32>
      %cst_17 = arith.constant 5.000000e-01 : f32
      %26 = vector.broadcast %cst_17 : f32 to vector<16x256xf32>
      %27 = arith.mulf %26, %25 : vector<16x256xf32>
      %28 = arith.mulf %15, %27 : vector<16x256xf32>
      %29 = arith.truncf %28 : vector<16x256xf32> to vector<16x256xbf16>
      %c0_18 = arith.constant 0 : index
      %c0_19 = arith.constant 0 : index
      %30 = vector.load %arg6[%c0_18, %c0_19] : memref<16x256xbf16, #tpu.memory_space<vmem>>, vector<16x256xbf16>
      tpu.vector_store %arg6[%c0_18, %c0_19], %29 {strides = array<i32>} : memref<16x256xbf16, #tpu.memory_space<vmem>>, vector<16x256xbf16>,
    } else {
    }
    return
  }
  func.func @transform_0(%arg0: i32, %arg1: i32, %arg2: i32) -> (i32, i32) {
    %c0_i32 = arith.constant 0 : i32
    return %arg0, %arg2 : i32, i32
  }
  func.func @transform_1(%arg0: i32, %arg1: i32, %arg2: i32) -> (i32, i32) {
    %c0_i32 = arith.constant 0 : i32
    return %arg2, %arg1 : i32, i32
  }
  func.func @transform_2(%arg0: i32, %arg1: i32, %arg2: i32) -> (i32, i32) {
    %c0_i32 = arith.constant 0 : i32
    %c0_i32_0 = arith.constant 0 : i32
    return %c0_i32, %arg1 : i32, i32
  }
  func.func @transform_3(%arg0: i32, %arg1: i32, %arg2: i32) -> (i32, i32) {
    %c0_i32 = arith.constant 0 : i32
    return %arg0, %arg1 : i32, i32
  }
}

module attributes {stable_mosaic.version = 11 : i64} {
  func.func @_linear_addln_kernel(%arg0: i32, %arg1: i32, %arg2: i32, %arg3: memref<16x256xbf16, #tpu.memory_space<vmem>>, %arg4: memref<256x128xbf16, #tpu.memory_space<vmem>>, %arg5: memref<1x128xf32, #tpu.memory_space<vmem>>, %arg6: memref<16x128xbf16, #tpu.memory_space<vmem>>, %arg7: memref<1x128xf32, #tpu.memory_space<vmem>>, %arg8: memref<1x128xf32, #tpu.memory_space<vmem>>, %arg9: memref<16x128xbf16, #tpu.memory_space<vmem>>, %arg10: memref<16x128xf32, #tpu.memory_space<vmem>>) attributes {dimension_semantics = [#tpu.dimension_semantics<parallel>, #tpu.dimension_semantics<parallel>, #tpu.dimension_semantics<arbitrary>], iteration_bounds = array<i64: 1, 1, 1>, scalar_prefetch = 0 : i64, scratch_operands = 1 : i64, tpu.core_type = #tpu.core_type<tc>, window_params = [{transform_indices = @transform_0, window_bounds = array<i64: 16, 256>}, {transform_indices = @transform_1, window_bounds = array<i64: 256, 128>}, {transform_indices = @transform_2, window_bounds = array<i64: 1, 128>}, {transform_indices = @transform_3, window_bounds = array<i64: 16, 128>}, {transform_indices = @transform_4, window_bounds = array<i64: 1, 128>}, {transform_indices = @transform_5, window_bounds = array<i64: 1, 128>}, {transform_indices = @transform_6, window_bounds = array<i64: 16, 128>}]} {
    %c0_i32 = arith.constant 0 : i32
    %0 = arith.cmpi eq, %arg2, %c0_i32 : i32
    %1 = arith.extui %0 : i1 to i32
    %c0_i32_0 = arith.constant 0 : i32
    %2 = arith.cmpi ne, %1, %c0_i32_0 : i32
    scf.if %2 {
      %cst_10 = arith.constant 0.000000e+00 : f32
      %12 = vector.broadcast %cst_10 : f32 to vector<16x128xf32>
      %c0_11 = arith.constant 0 : index
      %c0_12 = arith.constant 0 : index
      %13 = vector.load %arg10[%c0_11, %c0_12] : memref<16x128xf32, #tpu.memory_space<vmem>>, vector<16x128xf32>
      tpu.vector_store %arg10[%c0_11, %c0_12], %12 {strides = array<i32>} : memref<16x128xf32, #tpu.memory_space<vmem>>, vector<16x128xf32>,
    } else {
    }
    %c0 = arith.constant 0 : index
    %c0_1 = arith.constant 0 : index
    %3 = vector.load %arg10[%c0, %c0_1] : memref<16x128xf32, #tpu.memory_space<vmem>>, vector<16x128xf32>
    %c0_2 = arith.constant 0 : index
    %c0_3 = arith.constant 0 : index
    %4 = vector.load %arg3[%c0_2, %c0_3] : memref<16x256xbf16, #tpu.memory_space<vmem>>, vector<16x256xbf16>
    %c0_4 = arith.constant 0 : index
    %c0_5 = arith.constant 0 : index
    %5 = vector.load %arg4[%c0_4, %c0_5] : memref<256x128xbf16, #tpu.memory_space<vmem>>, vector<256x128xbf16>
    %cst = arith.constant dense<0.000000e+00> : vector<16x128xf32>
    %6 = tpu.matmul %4, %5, %cst {dimension_numbers = #tpu.dot_dimension_numbers<[1], [0], [0], [1], [0, 0, 1, 1], [], []>} : vector<16x256xbf16>, vector<256x128xbf16>, vector<16x128xf32> -> vector<16x128xf32>
    %7 = arith.addf %3, %6 : vector<16x128xf32>
    %c0_6 = arith.constant 0 : index
    %c0_7 = arith.constant 0 : index
    %8 = vector.load %arg10[%c0_6, %c0_7] : memref<16x128xf32, #tpu.memory_space<vmem>>, vector<16x128xf32>
    tpu.vector_store %arg10[%c0_6, %c0_7], %7 {strides = array<i32>} : memref<16x128xf32, #tpu.memory_space<vmem>>, vector<16x128xf32>,
    %c0_i32_8 = arith.constant 0 : i32
    %9 = arith.cmpi eq, %arg2, %c0_i32_8 : i32
    %10 = arith.extui %9 : i1 to i32
    %c0_i32_9 = arith.constant 0 : i32
    %11 = arith.cmpi ne, %10, %c0_i32_9 : i32
    scf.if %11 {
      %c0_10 = arith.constant 0 : index
      %c0_11 = arith.constant 0 : index
      %12 = vector.load %arg10[%c0_10, %c0_11] : memref<16x128xf32, #tpu.memory_space<vmem>>, vector<16x128xf32>
      %c0_12 = arith.constant 0 : index
      %c0_13 = arith.constant 0 : index
      %13 = vector.load %arg5[%c0_12, %c0_13] : memref<1x128xf32, #tpu.memory_space<vmem>>, vector<1x128xf32>
      %14 = vector.broadcast %13 : vector<1x128xf32> to vector<16x128xf32>
      %15 = arith.addf %12, %14 : vector<16x128xf32>
      %c0_14 = arith.constant 0 : index
      %c0_15 = arith.constant 0 : index
      %16 = vector.load %arg6[%c0_14, %c0_15] : memref<16x128xbf16, #tpu.memory_space<vmem>>, vector<16x128xbf16>
      %17 = arith.extf %16 : vector<16x128xbf16> to vector<16x128xf32>
      %18 = arith.addf %15, %17 : vector<16x128xf32>
      %cst_16 = arith.constant dense<0.000000e+00> : vector<16xf32>
      %19 = vector.multi_reduction <add>, %18, %cst_16 [1] : vector<16x128xf32> to vector<16xf32>
      %20 = vector.shape_cast %19 : vector<16xf32> to vector<16x1xf32>
      %cst_17 = arith.constant 1.280000e+02 : f32
      %21 = vector.broadcast %cst_17 : f32 to vector<16x1xf32>
      %22 = arith.divf %20, %21 : vector<16x1xf32>
      %23 = vector.broadcast %22 : vector<16x1xf32> to vector<16x128xf32>
      %24 = arith.subf %18, %23 : vector<16x128xf32>
      %25 = arith.mulf %24, %24 : vector<16x128xf32>
      %cst_18 = arith.constant dense<0.000000e+00> : vector<16xf32>
      %26 = vector.multi_reduction <add>, %25, %cst_18 [1] : vector<16x128xf32> to vector<16xf32>
      %27 = vector.shape_cast %26 : vector<16xf32> to vector<16x1xf32>
      %cst_19 = arith.constant 1.280000e+02 : f32
      %28 = vector.broadcast %cst_19 : f32 to vector<16x1xf32>
      %29 = arith.divf %27, %28 : vector<16x1xf32>
      %30 = vector.broadcast %22 : vector<16x1xf32> to vector<16x128xf32>
      %31 = arith.subf %18, %30 : vector<16x128xf32>
      %cst_20 = arith.constant 9.99999996E-13 : f32
      %32 = vector.broadcast %cst_20 : f32 to vector<16x1xf32>
      %33 = arith.addf %29, %32 : vector<16x1xf32>
      %34 = math.rsqrt %33 : vector<16x1xf32>
      %35 = vector.broadcast %34 : vector<16x1xf32> to vector<16x128xf32>
      %36 = arith.mulf %31, %35 : vector<16x128xf32>
      %c0_21 = arith.constant 0 : index
      %c0_22 = arith.constant 0 : index
      %37 = vector.load %arg7[%c0_21, %c0_22] : memref<1x128xf32, #tpu.memory_space<vmem>>, vector<1x128xf32>
      %38 = vector.broadcast %37 : vector<1x128xf32> to vector<16x128xf32>
      %39 = arith.mulf %36, %38 : vector<16x128xf32>
      %c0_23 = arith.constant 0 : index
      %c0_24 = arith.constant 0 : index
      %40 = vector.load %arg8[%c0_23, %c0_24] : memref<1x128xf32, #tpu.memory_space<vmem>>, vector<1x128xf32>
      %41 = vector.broadcast %40 : vector<1x128xf32> to vector<16x128xf32>
      %42 = arith.addf %39, %41 : vector<16x128xf32>
      %43 = arith.truncf %42 : vector<16x128xf32> to vector<16x128xbf16>
      %c0_25 = arith.constant 0 : index
      %c0_26 = arith.constant 0 : index
      %44 = vector.load %arg9[%c0_25, %c0_26] : memref<16x128xbf16, #tpu.memory_space<vmem>>, vector<16x128xbf16>
      tpu.vector_store %arg9[%c0_25, %c0_26], %43 {strides = array<i32>} : memref<16x128xbf16, #tpu.memory_space<vmem>>, vector<16x128xbf16>,
    } else {
    }
    return
  }
  func.func @transform_0(%arg0: i32, %arg1: i32, %arg2: i32) -> (i32, i32) {
    %c0_i32 = arith.constant 0 : i32
    return %arg0, %arg2 : i32, i32
  }
  func.func @transform_1(%arg0: i32, %arg1: i32, %arg2: i32) -> (i32, i32) {
    %c0_i32 = arith.constant 0 : i32
    return %arg2, %arg1 : i32, i32
  }
  func.func @transform_2(%arg0: i32, %arg1: i32, %arg2: i32) -> (i32, i32) {
    %c0_i32 = arith.constant 0 : i32
    %c0_i32_0 = arith.constant 0 : i32
    return %c0_i32, %arg1 : i32, i32
  }
  func.func @transform_3(%arg0: i32, %arg1: i32, %arg2: i32) -> (i32, i32) {
    %c0_i32 = arith.constant 0 : i32
    return %arg0, %arg1 : i32, i32
  }
  func.func @transform_4(%arg0: i32, %arg1: i32, %arg2: i32) -> (i32, i32) {
    %c0_i32 = arith.constant 0 : i32
    %c0_i32_0 = arith.constant 0 : i32
    return %c0_i32, %arg1 : i32, i32
  }
  func.func @transform_5(%arg0: i32, %arg1: i32, %arg2: i32) -> (i32, i32) {
    %c0_i32 = arith.constant 0 : i32
    %c0_i32_0 = arith.constant 0 : i32
    return %c0_i32, %arg1 : i32, i32
  }
  func.func @transform_6(%arg0: i32, %arg1: i32, %arg2: i32) -> (i32, i32) {
    %c0_i32 = arith.constant 0 : i32
    return %arg0, %arg1 : i32, i32
  }
}

module attributes {stable_mosaic.version = 11 : i64} {
  func.func @_linear_kernel(%arg0: i32, %arg1: i32, %arg2: i32, %arg3: memref<2x128xbf16, #tpu.memory_space<vmem>>, %arg4: memref<128x128xbf16, #tpu.memory_space<vmem>>, %arg5: memref<1x128xf32, #tpu.memory_space<vmem>>, %arg6: memref<2x128xf32, #tpu.memory_space<vmem>>, %arg7: memref<2x128xf32, #tpu.memory_space<vmem>>) attributes {dimension_semantics = [#tpu.dimension_semantics<parallel>, #tpu.dimension_semantics<parallel>, #tpu.dimension_semantics<arbitrary>], iteration_bounds = array<i64: 1, 1, 1>, scalar_prefetch = 0 : i64, scratch_operands = 1 : i64, tpu.core_type = #tpu.core_type<tc>, window_params = [{transform_indices = @transform_0, window_bounds = array<i64: 2, 128>}, {transform_indices = @transform_1, window_bounds = array<i64: 128, 128>}, {transform_indices = @transform_2, window_bounds = array<i64: 1, 128>}, {transform_indices = @transform_3, window_bounds = array<i64: 2, 128>}]} {
    %c0_i32 = arith.constant 0 : i32
    %0 = arith.cmpi eq, %arg2, %c0_i32 : i32
    %1 = arith.extui %0 : i1 to i32
    %c0_i32_0 = arith.constant 0 : i32
    %2 = arith.cmpi ne, %1, %c0_i32_0 : i32
    scf.if %2 {
      %cst_10 = arith.constant 0.000000e+00 : f32
      %12 = vector.broadcast %cst_10 : f32 to vector<2x128xf32>
      %c0_11 = arith.constant 0 : index
      %c0_12 = arith.constant 0 : index
      %13 = vector.load %arg7[%c0_11, %c0_12] : memref<2x128xf32, #tpu.memory_space<vmem>>, vector<2x128xf32>
      tpu.vector_store %arg7[%c0_11, %c0_12], %12 {strides = array<i32>} : memref<2x128xf32, #tpu.memory_space<vmem>>, vector<2x128xf32>,
    } else {
    }
    %c0 = arith.constant 0 : index
    %c0_1 = arith.constant 0 : index
    %3 = vector.load %arg7[%c0, %c0_1] : memref<2x128xf32, #tpu.memory_space<vmem>>, vector<2x128xf32>
    %c0_2 = arith.constant 0 : index
    %c0_3 = arith.constant 0 : index
    %4 = vector.load %arg3[%c0_2, %c0_3] : memref<2x128xbf16, #tpu.memory_space<vmem>>, vector<2x128xbf16>
    %c0_4 = arith.constant 0 : index
    %c0_5 = arith.constant 0 : index
    %5 = vector.load %arg4[%c0_4, %c0_5] : memref<128x128xbf16, #tpu.memory_space<vmem>>, vector<128x128xbf16>
    %cst = arith.constant dense<0.000000e+00> : vector<2x128xf32>
    %6 = tpu.matmul %4, %5, %cst {dimension_numbers = #tpu.dot_dimension_numbers<[1], [0], [0], [1], [0, 0, 1, 1], [], []>} : vector<2x128xbf16>, vector<128x128xbf16>, vector<2x128xf32> -> vector<2x128xf32>
    %7 = arith.addf %3, %6 : vector<2x128xf32>
    %c0_6 = arith.constant 0 : index
    %c0_7 = arith.constant 0 : index
    %8 = vector.load %arg7[%c0_6, %c0_7] : memref<2x128xf32, #tpu.memory_space<vmem>>, vector<2x128xf32>
    tpu.vector_store %arg7[%c0_6, %c0_7], %7 {strides = array<i32>} : memref<2x128xf32, #tpu.memory_space<vmem>>, vector<2x128xf32>,
    %c0_i32_8 = arith.constant 0 : i32
    %9 = arith.cmpi eq, %arg2, %c0_i32_8 : i32
    %10 = arith.extui %9 : i1 to i32
    %c0_i32_9 = arith.constant 0 : i32
    %11 = arith.cmpi ne, %10, %c0_i32_9 : i32
    scf.if %11 {
      %c0_10 = arith.constant 0 : index
      %c0_11 = arith.constant 0 : index
      %12 = vector.load %arg7[%c0_10, %c0_11] : memref<2x128xf32, #tpu.memory_space<vmem>>, vector<2x128xf32>
      %c0_12 = arith.constant 0 : index
      %c0_13 = arith.constant 0 : index
      %13 = vector.load %arg5[%c0_12, %c0_13] : memref<1x128xf32, #tpu.memory_space<vmem>>, vector<1x128xf32>
      %14 = vector.broadcast %13 : vector<1x128xf32> to vector<2x128xf32>
      %15 = arith.addf %12, %14 : vector<2x128xf32>
      %16 = math.tanh %15 : vector<2x128xf32>
      %c0_14 = arith.constant 0 : index
      %c0_15 = arith.constant 0 : index
      %17 = vector.load %arg6[%c0_14, %c0_15] : memref<2x128xf32, #tpu.memory_space<vmem>>, vector<2x128xf32>
      tpu.vector_store %arg6[%c0_14, %c0_15], %16 {strides = array<i32>} : memref<2x128xf32, #tpu.memory_space<vmem>>, vector<2x128xf32>,
    } else {
    }
    return
  }
  func.func @transform_0(%arg0: i32, %arg1: i32, %arg2: i32) -> (i32, i32) {
    %c0_i32 = arith.constant 0 : i32
    return %arg0, %arg2 : i32, i32
  }
  func.func @transform_1(%arg0: i32, %arg1: i32, %arg2: i32) -> (i32, i32) {
    %c0_i32 = arith.constant 0 : i32
    return %arg2, %arg1 : i32, i32
  }
  func.func @transform_2(%arg0: i32, %arg1: i32, %arg2: i32) -> (i32, i32) {
    %c0_i32 = arith.constant 0 : i32
    %c0_i32_0 = arith.constant 0 : i32
    return %c0_i32, %arg1 : i32, i32
  }
  func.func @transform_3(%arg0: i32, %arg1: i32, %arg2: i32) -> (i32, i32) {
    %c0_i32 = arith.constant 0 : i32
    return %arg0, %arg1 : i32, i32
  }
}

module attributes {stable_mosaic.version = 11 : i64} {
  func.func @_dual_head_kernel(%arg0: memref<2x128xf32, #tpu.memory_space<vmem>>, %arg1: memref<2x128xf32, #tpu.memory_space<vmem>>, %arg2: memref<512x128xf32, #tpu.memory_space<vmem>>, %arg3: memref<1x128xf32, #tpu.memory_space<vmem>>, %arg4: memref<2x128xf32, #tpu.memory_space<vmem>>) attributes {dimension_semantics = [], scalar_prefetch = 0 : i64, scratch_operands = 0 : i64, tpu.core_type = #tpu.core_type<tc>} {
    %c0 = arith.constant 0 : index
    %c0_0 = arith.constant 0 : index
    %0 = vector.load %arg0[%c0, %c0_0] : memref<2x128xf32, #tpu.memory_space<vmem>>, vector<2x128xf32>
    %c0_1 = arith.constant 0 : index
    %c0_2 = arith.constant 0 : index
    %1 = vector.load %arg1[%c0_1, %c0_2] : memref<2x128xf32, #tpu.memory_space<vmem>>, vector<2x128xf32>
    %2 = arith.mulf %0, %1 : vector<2x128xf32>
    %3 = arith.subf %0, %1 : vector<2x128xf32>
    %4 = math.absf %3 : vector<2x128xf32>
    %5 = tpu.concatenate %0, %1, %2, %4 in 1 : vector<2x128xf32>, vector<2x128xf32>, vector<2x128xf32>, vector<2x128xf32> -> vector<2x512xf32>
    %c0_3 = arith.constant 0 : index
    %c0_4 = arith.constant 0 : index
    %6 = vector.load %arg2[%c0_3, %c0_4] : memref<512x128xf32, #tpu.memory_space<vmem>>, vector<512x128xf32>
    %cst = arith.constant dense<0.000000e+00> : vector<2x128xf32>
    %7 = tpu.matmul %5, %6, %cst {dimension_numbers = #tpu.dot_dimension_numbers<[1], [0], [0], [1], [0, 0, 1, 1], [], []>} : vector<2x512xf32>, vector<512x128xf32>, vector<2x128xf32> -> vector<2x128xf32>
    %c0_5 = arith.constant 0 : index
    %c0_6 = arith.constant 0 : index
    %8 = vector.load %arg3[%c0_5, %c0_6] : memref<1x128xf32, #tpu.memory_space<vmem>>, vector<1x128xf32>
    %9 = vector.broadcast %8 : vector<1x128xf32> to vector<2x128xf32>
    %10 = arith.addf %7, %9 : vector<2x128xf32>
    %c0_7 = arith.constant 0 : index
    %c0_8 = arith.constant 0 : index
    %11 = vector.load %arg4[%c0_7, %c0_8] : memref<2x128xf32, #tpu.memory_space<vmem>>, vector<2x128xf32>
    tpu.vector_store %arg4[%c0_7, %c0_8], %10 {strides = array<i32>} : memref<2x128xf32, #tpu.memory_space<vmem>>, vector<2x128xf32>,
    return
  }
}

</mosaic_0001>

<bundles_post_ra>
// kernel: dual_model_forward.37
= control target key start
LH: loop header
LB: loop body
LE: loop exit
PB: predicated region body
PF: predicated region fallthrough
CT: control target
= control target key end

     0   :  { %s124_s0 = inlined_call_operand.vmem [shape: bf16[16,128], index: 0, kind: input, shape index: {}]   ;;  %s125_s1 = inlined_call_operand.vmem [shape: f32[1,128], index: 1, kind: input, shape index: {}]   ;;  %s126_s2 = inlined_call_operand.vmem [shape: f32[1,128], index: 2, kind: input, shape index: {}]   ;;  %s127_s3 = inlined_call_operand.vmem [shape: bf16[16,128], index: 3, kind: output, shape index: {}]  }
   0x1   :  { %v80_v0 = vld [vmem:[%s124_s0] sm:$0xff]  }
   0x2   :  { %v81_v1 = vunpack.c.l.bf16 %v80_v0  ;;  %v82_v2 = vunpack.c.h.bf16 %v80_v0  ;;  %v73_v19 = vld [vmem:[%s125_s1] ss:$0 sm:$0xff] }
   0x3   :  { %v74_v23 = vld [vmem:[%s126_s2] ss:$0 sm:$0xff] }
   0x4   :  { %18 = vadd.xlane.f32.xlu0 %v81_v1 }
   0x8   :  { %20 = vadd.xlane.f32.xlu0 %v82_v2 }
  0x91   :  { %v19_v3 = vpop.xlane.xlu0 %18 }
  0x92   :  { %v23_v4 = vmul.f32 0.0078125, %v19_v3 }
  0x94   :  { %v25_v5 = vsub.f32 %v81_v1, %v23_v4 }
  0x95   :  { %v21_v6 = vpop.xlane.xlu0 %20 }
  0x96   :  { %v24_v7 = vmul.f32 0.0078125, %v21_v6  ;;  %v27_v8 = vmul.f32 %v25_v5, %v25_v5 }
  0x98   :  { %v26_v9 = vsub.f32 %v82_v2, %v24_v7  ;;  %29 = vadd.xlane.f32.xlu1 %v27_v8 }
  0x9a   :  { %v28_v10 = vmul.f32 %v26_v9, %v26_v9 }
  0x9c   :  { %31 = vadd.xlane.f32.xlu1 %v28_v10 }
 0x125   :  { %v30_v11 = vpop.xlane.xlu1 %29 }
 0x126   :  { %v33_v12 = vmul.f32 0.0078125, %v30_v11 }
 0x128   :  { %v35_v13 = vadd.f32 1e-12, %v33_v12 }
 0x129   :  { %v32_v14 = vpop.xlane.xlu1 %31 }
 0x12a   :  { %88 = vrsqrt.f32 %v35_v13  ;;  %v34_v15 = vmul.f32 0.0078125, %v32_v14 }
 0x12c   :  { %v36_v16 = vadd.f32 1e-12, %v34_v15 }
 0x12e   :  { %90 = vrsqrt.f32 %v36_v16 }
 0x134   :  { %v89_v17 = vpop.eup %88 }
 0x135   :  { %v39_v18 = vmul.f32 %v89_v17, %v25_v5 }
 0x137   :  { %v48_v21 = vmul.f32 %v73_v19, %v39_v18 }
 0x138   :  { %v91_v20 = vpop.eup %90 }
 0x139   :  { %v40_v22 = vmul.f32 %v91_v20, %v26_v9  ;;  %v57_v25 = vadd.f32 %v74_v23, %v48_v21 }
 0x13b   :  { %v49_v24 = vmul.f32 %v73_v19, %v40_v22 }
 0x13d   :  { %v58_v26 = vadd.f32 %v74_v23, %v49_v24 }
 0x13f   :  { %v86_v27 = vpack.c.bf16 %v58_v26, %v57_v25 }
 0x141   :  { %87 = vst [vmem:[%s127_s3] sm:$0xff] %v86_v27  }

// kernel: dual_model_forward.40
= control target key start
LH: loop header
LB: loop body
LE: loop exit
PB: predicated region body
PF: predicated region fallthrough
CT: control target
= control target key end

     0   :  { %v293_v0 = vmov 0.0   ;;  %vm294_vm0 = vmmov 0   ;;  %s372_s1 = inlined_call_operand.vmem [shape: bf16[128,128], index: 1, kind: input, shape index: {}]   ;;  %s373_s0 = inlined_call_operand.vmem [shape: bf16[16,128], index: 0, kind: input, shape index: {}]   ;;  %s374_s3 = inlined_call_operand.vmem [shape: bf16[16,128], index: 3, kind: input, shape index: {}]   ;;  %s375_s2 = inlined_call_operand.vmem [shape: f32[1,128], index: 2, kind: input, shape index: {}]   ;;  %s376_s4 = inlined_call_operand.vmem [shape: f32[1,128], index: 4, kind: input, shape index: {}]   ;;  %s377_s5 = inlined_call_operand.vmem [shape: f32[1,128], index: 5, kind: input, shape index: {}]   ;;  %s378_s6 = inlined_call_operand.vmem [shape: bf16[16,128], index: 6, kind: output, shape index: {}]  }
   0x1   :  { %258 = vmatprep.subr.bf16.mxu0 %v293_v0  ;;  %v280_v1 = vld [vmem:[%s372_s1] sm:$0xff]   ;;  %274 = vmatprep.mubr.msk.bf16.mxu0 %vm294_vm0, %v293_v0  ;;  %v281_v2 = vld [vmem:[%s372_s1 + $0x8] sm:$0xff]   ;;  %v282_v3 = vld [vmem:[%s372_s1 + $0x10] sm:$0xff]  }
   0x2   :  { %259 = vmatpush3.bf16.msra.mxu0 %v280_v1  ;;  %v283_v4 = vld [vmem:[%s372_s1 + $0x18] sm:$0xff]   ;;  %v284_v5 = vld [vmem:[%s372_s1 + $0x20] sm:$0xff]   ;;  %v285_v6 = vld [vmem:[%s372_s1 + $0x28] sm:$0xff]  }
   0x3   :  { %260 = vmatprep.subr.bf16.mxu0 %v293_v0  ;;  %v286_v7 = vld [vmem:[%s372_s1 + $0x30] sm:$0xff]   ;;  %v287_v8 = vld [vmem:[%s372_s1 + $0x38] sm:$0xff]   ;;  %v288_v9 = vld [vmem:[%s373_s0] sm:$0xff]  }
   0x4   :  { %v241_v10 = vld [vmem:[%s374_s3] sm:$0xff]  }
   0x5   :  { %v233_v11 = vld [vmem:[%s375_s2] ss:$0 sm:$0xff]  ;;  %v242_v12 = vunpack.c.l.bf16 %v241_v10  ;;  %v243_v20 = vunpack.c.h.bf16 %v241_v10 }
   0x6   :  { %261 = vmatpush3.bf16.msra.mxu0 %v281_v2  ;;  %v234_v38 = vld [vmem:[%s376_s4] ss:$0 sm:$0xff] }
   0x7   :  { %262 = vmatprep.subr.bf16.mxu0 %v293_v0  ;;  %v235_v42 = vld [vmem:[%s377_s5] ss:$0 sm:$0xff] }
   0xa   :  { %263 = vmatpush3.bf16.msra.mxu0 %v282_v3 }
   0xb   :  { %264 = vmatprep.subr.bf16.mxu0 %v293_v0 }
   0xe   :  { %265 = vmatpush3.bf16.msra.mxu0 %v283_v4 }
   0xf   :  { %266 = vmatprep.subr.bf16.mxu0 %v293_v0 }
  0x12   :  { %267 = vmatpush3.bf16.msra.mxu0 %v284_v5 }
  0x13   :  { %268 = vmatprep.subr.bf16.mxu0 %v293_v0 }
  0x16   :  { %269 = vmatpush3.bf16.msra.mxu0 %v285_v6 }
  0x17   :  { %270 = vmatprep.subr.bf16.mxu0 %v293_v0 }
  0x1a   :  { %271 = vmatpush3.bf16.msra.mxu0 %v286_v7 }
  0x1b   :  { %272 = vmatprep.subr.bf16.mxu0 %v293_v0 }
  0x1e   :  { %273 = vmatpush3.bf16.msra.mxu0 %v287_v8 }
  0x21   :  { %275 = vmatmul.mubr.bf16.vlgmr.msra.gmra.mrb[0].mxu0 %v288_v9 }
  0xf4   :  { %v138_v13 = vpop.f32.mrb[0].mxu0 }
  0xf5   :  { %v161_v14 = vadd.f32 %v233_v11, %v138_v13  ;;  %v276_v15 = vpop.f32.mrb[1].mxu0 }
  0xf6   :  { %v141_v16 = vpop.f32.mrb[2].mxu0 }
  0xf7   :  { %v162_v17 = vadd.f32 %v233_v11, %v141_v16  ;;  %v277_v18 = vpop.f32.mrb[3].mxu0  ;;  %v167_v19 = vadd.f32 %v242_v12, %v161_v14 }
  0xf9   :  { %169 = vadd.xlane.f32.xlu0 %v167_v19  ;;  %v168_v21 = vadd.f32 %v243_v20, %v162_v17 }
  0xfd   :  { %171 = vadd.xlane.f32.xlu0 %v168_v21 }
 0x186   :  { %v170_v22 = vpop.xlane.xlu0 %169 }
 0x187   :  { %v174_v23 = vmul.f32 0.0078125, %v170_v22 }
 0x189   :  { %v176_v24 = vsub.f32 %v167_v19, %v174_v23 }
 0x18a   :  { %v172_v25 = vpop.xlane.xlu0 %171 }
 0x18b   :  { %v175_v26 = vmul.f32 0.0078125, %v172_v25  ;;  %v178_v27 = vmul.f32 %v176_v24, %v176_v24 }
 0x18d   :  { %v177_v28 = vsub.f32 %v168_v21, %v175_v26  ;;  %180 = vadd.xlane.f32.xlu1 %v178_v27 }
 0x18f   :  { %v179_v29 = vmul.f32 %v177_v28, %v177_v28 }
 0x191   :  { %182 = vadd.xlane.f32.xlu1 %v179_v29 }
 0x21a   :  { %v181_v30 = vpop.xlane.xlu1 %180 }
 0x21b   :  { %v184_v31 = vmul.f32 0.0078125, %v181_v30 }
 0x21d   :  { %v186_v32 = vadd.f32 1e-12, %v184_v31 }
 0x21e   :  { %v183_v33 = vpop.xlane.xlu1 %182 }
 0x21f   :  { %289 = vrsqrt.f32 %v186_v32  ;;  %v185_v34 = vmul.f32 0.0078125, %v183_v33 }
 0x221   :  { %v187_v35 = vadd.f32 1e-12, %v185_v34 }
 0x223   :  { %291 = vrsqrt.f32 %v187_v35 }
 0x229   :  { %v290_v36 = vpop.eup %289 }
 0x22a   :  { %v190_v37 = vmul.f32 %v290_v36, %v176_v24 }
 0x22c   :  { %v199_v40 = vmul.f32 %v234_v38, %v190_v37 }
 0x22d   :  { %v292_v39 = vpop.eup %291 }
 0x22e   :  { %v191_v41 = vmul.f32 %v292_v39, %v177_v28  ;;  %v208_v44 = vadd.f32 %v235_v42, %v199_v40 }
 0x230   :  { %v200_v43 = vmul.f32 %v234_v38, %v191_v41 }
 0x232   :  { %v209_v45 = vadd.f32 %v235_v42, %v200_v43 }
 0x234   :  { %v247_v46 = vpack.c.bf16 %v209_v45, %v208_v44 }
 0x236   :  { %248 = vst [vmem:[%s378_s6] sm:$0xff] %v247_v46  }

// kernel: dual_model_forward.39
= control target key start
LH: loop header
LB: loop body
LE: loop exit
PB: predicated region body
PF: predicated region fallthrough
CT: control target
= control target key end

     0   :  { %s1159_s15 = smov 0   ;;  %s1161_s16 = smov 0   ;;  %s1286_s0 = inlined_call_operand.vmem [shape: bf16[2,8,384], index: 0, kind: input, shape index: {}, may-alias: {0,1,2}]   ;;  %s1287_s1 = inlined_call_operand.vmem [shape: bf16[2,8,384], index: 1, kind: input, shape index: {}, may-alias: {0,1,2}]   ;;  %s1288_s2 = inlined_call_operand.vmem [shape: bf16[2,8,384], index: 2, kind: input, shape index: {}, may-alias: {0,1,2}]   ;;  %s1289_s3 = inlined_call_operand.vmem [shape: f32[2,1,8], index: 3, kind: input, shape index: {}]   ;;  %s1290_s4 = inlined_call_operand.vmem [shape: bf16[2,8,128], index: 4, kind: output, shape index: {}]  }
   0x1   :  { %s1163_s17 = smov 0  }
   0x2 LB: > { %s33_s18 = sadd.s32 1, %s1123_s16  ;;  %p967_p0 = scmp.ge.s32.totalorder %s1127_s17, 1  ;;  %s1127_s17 = sphi %s1163_s17, %s14_s17   ;;  %s1123_s16 = sphi %s1161_s16, %s1292_s16   ;;  %s1119_s15 = sphi %s1159_s15, %s1291_s15  }
   0x3   : > { %p35_p1 = scmp.ge.s32.totalorder %s33_s18, 2  ;;  %p242_p2 = scmp.lt.s32.totalorder %s1127_s17, 3 }
   0x5   : > { %s1294_s18 = smov (%p35_p1, %s33_s18), 0  ;;  %p243_p3 = pnand %p967_p0, %p242_p2 }
   0x6   : > { %p301_p4 = scmp.lt.s32.totalorder (!%p243_p3), %s1119_s15, 1  ;;  %v1129_v0 = vmov (!%p243_p3), 0.0   ;;  %vm1130_vm0 = vmmov (!%p243_p3), 0   ;;  %vm357_vm1 = vcmask (!%p243_p3), 261120   ;;  %vm404_vm2 = vcmask (!%p243_p3), 64512   ;;  %s1131_s30 = smov (!%p243_p3), 96  }
   0x7   : > { %246 = sbr.rel (%p243_p3) target bundleno = 1480 (0x5c8), region = 36  ;;  %1006 = vmatprep.subr.bf16.mxu0 (!%p243_p3), %v1129_v0  ;;  %1008 = vmatprep.mubr.msk.bf16.mxu0 (!%p243_p3), %vm1130_vm0, %v1129_v0  ;;  %s1132_s5 = smov (!%p243_p3), 64   ;;  %vm420_vm3 = vcmask (!%p243_p3), 1043456   ;;  %vm816_vm4 = vcmask (!%p243_p3), 523264   ;;  %vm818_vm5 = vcmask (!%p243_p3), 785408  }
   0x8   : > { %1012 = vmatprep.subr.bf16.mxu1 (!%p243_p3), %v1129_v0  ;;  %1014 = vmatprep.mubr.msk.bf16.mxu1 (!%p243_p3), %vm1130_vm0, %v1129_v0  ;;  %s1133_s6 = smov (!%p243_p3), 32  }
   0xe   : > { %s1296_s15 = smov (!%p301_p4, %s1119_s15), 1 }
   0xf   : > { %s1186_s19 = smul.u32 12, %s1296_s15  ;;  %s335_s29 = scalar_lea.vmem %s1289_s3, %s1296_s15 }
  0x10   : > { %v1205_v4 = vld [vmem:[%s335_s29] ss:$0 sm:$0xff]  ;;  %s971_s11 = sshll.u32 %s1296_s15, 2 }
  0x11   : > { %s987_s20 = sadd.s32 4, %s1186_s19  ;;  %s312_s26 = scalar_lea.vmem %s1286_s0, %s1186_s19 }
  0x12   : > { %s321_s23 = scalar_lea.vmem %s1287_s1, %s987_s20  ;;  %v348_v3 = vld [vmem:[%s312_s26] sm:$0xf]  ;;  %s989_s7 = sadd.s32 8, %s1186_s19 }
  0x13   : > { %v349_v1 = vld [vmem:[%s321_s23] sm:$0xf]  ;;  %v975_v12 = vcombine.low %v348_v3, %v348_v3  ;;  %s331_s10 = scalar_lea.vmem %s1288_s2, %s989_s7  ;;  %s345_s14 = scalar_lea.vmem %s1290_s4, %s971_s11 }
  0x14   : > { %v362_v2 = vsel %vm357_vm1, %v349_v1, 0  ;;  %v976_v11 = vcombine.low %v349_v1, %v349_v1  ;;  %v1219_v18 = vld [vmem:[%s331_s10] sm:$0xf] }
  0x15   : > { %1007 = vmatpush3.bf16.xpose.msra.mxu0 %v362_v2  ;;  %v422_v19 = vsel %vm420_vm3, %v1219_v18, 0  ;;  %v978_v2 = vcombine.low %v1219_v18, %v1219_v18 }
  0x16   : > { %1024 = vmatprep.subr.bf16.mxu0 %v1129_v0  ;;  %472 = vrot.lane.b32.xlu1 %v976_v11, %s1131_s30 }
  0x17   : > { %1013 = vmatpush3.bf16.msra.mxu1 %v422_v19 }
  0x18   : > { %1018 = vmatprep.subr.bf16.mxu1 %v1129_v0 }
  0x1a   : > { %467 = vrot.lane.b32.xlu1 %v975_v12, %s1131_s30 }
  0x1c   : > { %1009 = vmatmul.mubr.msk.bf16.vlgmr.msra.gmra.mrb[0].mxu0 %vm357_vm1, %v348_v3 }
  0x1d   : > { %1026 = vmatprep.mubr.msk.bf16.mxu0 %vm1130_vm0, %v1129_v0 }
  0x1e   : > { %583 = vrot.lane.b32.xlu1 %v975_v12, %s1132_s5 }
  0x22   : > { %695 = vrot.lane.b32.xlu1 %v976_v11, %s1133_s6 }
  0x26   : > { %693 = vrot.lane.b32.xlu1 %v975_v12, %s1133_s6 }
  0x88   : > { %v473_v22 = vpop.permute.xlu1 %472 }
  0x89   : > { %v478_v24 = vsel %vm357_vm1, %v473_v22, 0 }
  0x8c   : > { %v468_v26 = vpop.permute.xlu1 %467 }
  0x90   : > { %v584_v28 = vpop.permute.xlu1 %583 }
  0x94   : > { %v696_v30 = vpop.permute.xlu1 %695 }
  0x95   : > { %v701_v31 = vsel %vm357_vm1, %v696_v30, 0 }
  0x98   : > { %v694_v32 = vpop.permute.xlu1 %693 }
  0xef   : > { %v398_v5 = vpop.f32.mrb[0].mxu0 }
  0xf0   : > { %v399_v6 = vadd.f32 %v1205_v4, %v398_v5  ;;  %v1010_v7 = vpop.f32.mrb[1].mxu0 }
  0xf1   : > { %v401_v8 = vpop.f32.mrb[2].mxu0 }
  0xf2   : > { %v1011_v9 = vpop.f32.mrb[3].mxu0  ;;  %v405_v10 = vsel %vm404_vm2, %v399_v6, -inf }
  0xf3   : > { %406 = vmax.xlane.f32.xlu0 %v405_v10 }
 0x180   : > { %v407_v13 = vpop.xlane.xlu0 %406 }
 0x181   : > { %v408_v14 = vsub.f32 %v399_v6, %v407_v13 }
 0x183   : > { %v409_v15 = vmul.f32 1.442695, %v408_v14 }
 0x185   : > { %1089 = vpow2.f32 %v409_v15 }
 0x18f   : > { %v1090_v16 = vpop.eup %1089 }
 0x190   : > { %v411_v17 = vsel %vm404_vm2, %v1090_v16, 0.0 }
 0x191   : > { %412 = vadd.xlane.f32.xlu0 %v411_v17 }
 0x1a7   : > { %585 = vrot.lane.b32.xlu0 %v976_v11, %s1132_s5 }
 0x21e   : > { %v413_v20 = vpop.xlane.xlu0 %412 }
 0x21f   : > { %1091 = vrcp.f32 %v413_v20 }
 0x222   : > { %v586_v27 = vpop.permute.xlu0 %585 }
 0x223   : > { %v591_v29 = vsel %vm357_vm1, %v586_v27, 0 }
 0x229   : > { %v1092_v21 = vpop.eup %1091 }
 0x22a   : > { %v415_v23 = vmul.f32 %v1092_v21, %v1090_v16 }
 0x22c   : > { %v416_v25 = vpack.c.bf16 %v415_v23, %v415_v23 }
 0x22e   : > { %1015 = vmatmul.mubr.msk.bf16.vlgmr.msra.gmra.mrb[0].mxu1 %vm404_vm2, %v416_v25 }
 0x22f   : > { %1019 = vmatpush3.bf16.xpose.msra.mxu1 %v478_v24  ;;  %1020 = vmatprep.mubr.msk.bf16.mxu1 %vm1130_vm0, %v1129_v0 }
 0x230   : > { %1030 = vmatprep.subr.bf16.mxu1 %v1129_v0 }
 0x236   : > { %1021 = vmatmul.mubr.msk.bf16.vlgmr.msra.gmra.mrb[4].mxu1 %vm357_vm1, %v468_v26 }
 0x237   : > { %1031 = vmatpush3.bf16.xpose.msra.mxu1 %v591_v29  ;;  %1032 = vmatprep.mubr.msk.bf16.mxu1 %vm1130_vm0, %v1129_v0 }
 0x238   : > { %1042 = vmatprep.subr.bf16.mxu1 %v1129_v0 }
 0x23e   : > { %1033 = vmatmul.mubr.msk.bf16.vlgmr.msra.gmra.mrb[8].mxu1 %vm357_vm1, %v584_v28 }
 0x23f   : > { %1043 = vmatpush3.bf16.xpose.msra.mxu1 %v701_v31  ;;  %1044 = vmatprep.mubr.msk.bf16.mxu1 %vm1130_vm0, %v1129_v0 }
 0x246   : > { %1045 = vmatmul.mubr.msk.bf16.vlgmr.msra.gmra.mrb[12].mxu1 %vm357_vm1, %v694_v32 }
 0x301   : > { %v1240_v33 = vpop.f32.mrb[0].mxu1 }
 0x302   : > { %v1016_v34 = vpop.f32.mrb[1].mxu1 }
 0x303   : > { %v461_v35 = vpop.f32.mrb[2].mxu1 }
 0x304   : > { %v1017_v36 = vpop.f32.mrb[3].mxu1 }
 0x309   : > { %v514_v37 = vpop.f32.mrb[4].mxu1 }
 0x30a   : > { %v515_v38 = vadd.f32 %v1205_v4, %v514_v37  ;;  %v1022_v39 = vpop.f32.mrb[5].mxu1 }
 0x30b   : > { %v517_v40 = vpop.f32.mrb[6].mxu1 }
 0x30c   : > { %v1023_v41 = vpop.f32.mrb[7].mxu1  ;;  %v520_v42 = vsel %vm404_vm2, %v515_v38, -inf }
 0x30d   : > { %521 = vmax.xlane.f32.xlu1 %v520_v42 }
 0x311   : > { %v627_v43 = vpop.f32.mrb[8].mxu1 }
 0x312   : > { %v628_v44 = vadd.f32 %v1205_v4, %v627_v43  ;;  %v1034_v45 = vpop.f32.mrb[9].mxu1 }
 0x313   : > { %v630_v46 = vpop.f32.mrb[10].mxu1 }
 0x314   : > { %v633_v47 = vsel %vm404_vm2, %v628_v44, -inf  ;;  %v1035_v48 = vpop.f32.mrb[11].mxu1 }
 0x315   : > { %634 = vmax.xlane.f32.xlu0 %v633_v47 }
 0x319   : > { %v737_v49 = vpop.f32.mrb[12].mxu1 }
 0x31a   : > { %v738_v50 = vadd.f32 %v1205_v4, %v737_v49  ;;  %v1046_v51 = vpop.f32.mrb[13].mxu1 }
 0x31b   : > { %v740_v52 = vpop.f32.mrb[14].mxu1 }
 0x31c   : > { %v743_v53 = vsel %vm404_vm2, %v738_v50, -inf  ;;  %v1047_v54 = vpop.f32.mrb[15].mxu1 }
 0x31d   : > { %744 = vmax.xlane.f32.xlu1 %v743_v53 }
 0x39a   : > { %v522_v55 = vpop.xlane.xlu1 %521 }
 0x39b   : > { %v523_v56 = vsub.f32 %v515_v38, %v522_v55 }
 0x39d   : > { %v524_v57 = vmul.f32 1.442695, %v523_v56 }
 0x39f   : > { %1093 = vpow2.f32 %v524_v57 }
 0x3a2   : > { %v635_v58 = vpop.xlane.xlu0 %634 }
 0x3a3   : > { %v636_v59 = vsub.f32 %v628_v44, %v635_v58 }
 0x3a5   : > { %v637_v60 = vmul.f32 1.442695, %v636_v59 }
 0x3a7   : > { %1095 = vpow2.f32 %v637_v60 }
 0x3a9   : > { %v1094_v61 = vpop.eup %1093 }
 0x3aa   : > { %v526_v62 = vsel %vm404_vm2, %v1094_v61, 0.0  ;;  %v745_v3 = vpop.xlane.xlu1 %744 }
 0x3ab   : > { %527 = vadd.xlane.f32.xlu1 %v526_v62  ;;  %v746_v4 = vsub.f32 %v738_v50, %v745_v3 }
 0x3ad   : > { %v747_v5 = vmul.f32 1.442695, %v746_v4 }
 0x3af   : > { %1097 = vpow2.f32 %v747_v5 }
 0x3b1   : > { %v1096_v63 = vpop.eup %1095 }
 0x3b2   : > { %v639_v1 = vsel %vm404_vm2, %v1096_v63, 0.0 }
 0x3b3   : > { %640 = vadd.xlane.f32.xlu0 %v639_v1 }
 0x3b9   : > { %v1098_v6 = vpop.eup %1097 }
 0x3ba   : > { %v749_v7 = vsel %vm404_vm2, %v1098_v6, 0.0 }
 0x3bc   : > { %645 = vrot.lane.b32.xlu1 %v978_v2, %s1132_s5 }
 0x3c9   : > { %535 = vrot.lane.b32.xlu0 %v978_v2, %s1131_s30 }
 0x3e0   : > { %750 = vadd.xlane.f32.xlu1 %v749_v7 }
 0x3f1   : > { %755 = vrot.lane.b32.xlu1 %v978_v2, %s1133_s6 }
 0x438   : > { %v528_v8 = vpop.xlane.xlu1 %527 }
 0x439   : > { %1099 = vrcp.f32 %v528_v8 }
 0x43c   : > { %v646_v14 = vpop.permute.xlu1 %645 }
 0x43d   : > { %v651_v16 = vsel %vm420_vm3, %v646_v14, 0 }
 0x440   : > { %v641_v9 = vpop.xlane.xlu0 %640 }
 0x441   : > { %1101 = vrcp.f32 %v641_v9 }
 0x443   : > { %v1100_v10 = vpop.eup %1099 }
 0x444   : > { %v530_v11 = vmul.f32 %v1100_v10, %v1094_v61  ;;  %v536_v12 = vpop.permute.xlu0 %535 }
 0x445   : > { %v541_v13 = vsel %vm420_vm3, %v536_v12, 0 }
 0x446   : > { %1025 = vmatpush3.bf16.msra.mxu0 %v541_v13  ;;  %v531_v15 = vpack.c.bf16 %v530_v11, %v530_v11 }
 0x447   : > { %1036 = vmatprep.subr.bf16.mxu0 %v1129_v0 }
 0x449   : > { %1027 = vmatmul.mubr.msk.bf16.vlgmr.msra.gmra.mrb[4].mxu0 %vm404_vm2, %v531_v15 }
 0x44a   : > { %1037 = vmatpush3.bf16.msra.mxu0 %v651_v16  ;;  %1038 = vmatprep.mubr.msk.bf16.mxu0 %vm1130_vm0, %v1129_v0 }
 0x44b   : > { %v1102_v17 = vpop.eup %1101  ;;  %1048 = vmatprep.subr.bf16.mxu0 %v1129_v0 }
 0x44c   : > { %v643_v18 = vmul.f32 %v1102_v17, %v1096_v63 }
 0x44e   : > { %v644_v19 = vpack.c.bf16 %v643_v18, %v643_v18 }
 0x451   : > { %1039 = vmatmul.mubr.msk.bf16.vlgmr.msra.gmra.mrb[8].mxu0 %vm404_vm2, %v644_v19 }
 0x452   : > { %1050 = vmatprep.mubr.msk.bf16.mxu0 %vm1130_vm0, %v1129_v0 }
 0x46d   : > { %v751_v20 = vpop.xlane.xlu1 %750 }
 0x46e   : > { %1103 = vrcp.f32 %v751_v20 }
 0x471   : > { %v756_v21 = vpop.permute.xlu1 %755 }
 0x472   : > { %v761_v22 = vsel %vm420_vm3, %v756_v21, 0 }
 0x473   : > { %1049 = vmatpush3.bf16.msra.mxu0 %v761_v22 }
 0x478   : > { %v1104_v23 = vpop.eup %1103 }
 0x479   : > { %v753_v24 = vmul.f32 %v1104_v23, %v1098_v6 }
 0x47b   : > { %v754_v25 = vpack.c.bf16 %v753_v24, %v753_v24 }
 0x47d   : > { %1051 = vmatmul.mubr.msk.bf16.vlgmr.msra.gmra.mrb[12].mxu0 %vm404_vm2, %v754_v25 }
 0x51c   : > { %v577_v26 = vpop.f32.mrb[4].mxu0 }
 0x51d   : > { %804 = vrot.lane.b32.xlu0 %v577_v26, %s1133_s6  ;;  %v1028_v27 = vpop.f32.mrb[5].mxu0 }
 0x51e   : > { %v580_v28 = vpop.f32.mrb[6].mxu0 }
 0x51f   : > { %v1029_v29 = vpop.f32.mrb[7].mxu0 }
 0x524   : > { %v687_v30 = vpop.f32.mrb[8].mxu0 }
 0x525   : > { %808 = vrot.lane.b32.xlu1 %v687_v30, %s1132_s5  ;;  %v1040_v0 = vpop.f32.mrb[9].mxu0 }
 0x526   : > { %v690_v31 = vpop.f32.mrb[10].mxu0 }
 0x527   : > { %v1041_v32 = vpop.f32.mrb[11].mxu0 }
 0x550   : > { %v797_v34 = vpop.f32.mrb[12].mxu0 }
 0x551   : > { %812 = vrot.lane.b32.xlu0 %v797_v34, %s1131_s30  ;;  %v1052_v35 = vpop.f32.mrb[13].mxu0 }
 0x552   : > { %v800_v36 = vpop.f32.mrb[14].mxu0 }
 0x553   : > { %v1053_v37 = vpop.f32.mrb[15].mxu0 }
 0x58f   : > { %v805_v38 = vpop.permute.xlu0 %804 }
 0x590   : > { %v815_v40 = vsel %vm357_vm1, %v1240_v33, %v805_v38 }
 0x597   : > { %v809_v39 = vpop.permute.xlu1 %808 }
 0x598   : > { %v817_v41 = vsel %vm816_vm4, %v815_v40, %v809_v39 }
 0x5c3   : > { %v813_v42 = vpop.permute.xlu0 %812 }
 0x5c4   : > { %v819_v43 = vsel %vm818_vm5, %v817_v41, %v813_v42 }
 0x5c5   : > { %v820_v44 = vpack.c.bf16 %v819_v43, %v819_v43 }
 0x5c7   : > { %821 = vst [vmem:[%s345_s14] sm:$0xf] %v820_v44 }
 0x5c8 PF: > { %s14_s17 = sadd.s32 1, %s1127_s17   ;;  %s1291_s15 = smov %s1123_s16 }
 0x5c9   : > { %p11_p5 = scmp.ge.s32.totalorder %s14_s17, 4   ;;  %s1292_s16 = smov %s1294_s18 }
 0x5cb   :  { %13 = sbr.rel (!%p11_p5) target bundleno = 2 (0x2), region = 75 }

// kernel: dual_model_forward.38
= control target key start
LH: loop header
LB: loop body
LE: loop exit
PB: predicated region body
PF: predicated region fallthrough
CT: control target
= control target key end

     0   :  { %v453_v0 = vmov 0.0   ;;  %vm454_vm0 = vmmov 0   ;;  %v455_v3 = vmov 0   ;;  %v306_v27 = vlaneseq  ;;  %s566_s1 = inlined_call_operand.vmem [shape: bf16[128,384], index: 1, kind: input, shape index: {}]   ;;  %s567_s0 = inlined_call_operand.vmem [shape: bf16[16,128], index: 0, kind: input, shape index: {}]   ;;  %s568_s2 = inlined_call_operand.vmem [shape: f32[1,384], index: 2, kind: input, shape index: {}]   ;;  %s569_s3 = inlined_call_operand.vmem [shape: bf16[16,384], index: 3, kind: output, shape index: {}]  }
   0x1   :  { %397 = vmatprep.subr.bf16.mxu1 %v453_v0  ;;  %v420_v1 = vld [vmem:[%s566_s1 + $0x4] ss:$12 sps:$4 sm:$0xff]   ;;  %413 = vmatprep.mubr.msk.bf16.mxu1 %vm454_vm0, %v453_v0  ;;  %v422_v2 = vld [vmem:[%s566_s1 + $0x8] ss:$12 sps:$4 sm:$0xff]   ;;  %v423_v4 = vld [vmem:[%s566_s1] ss:$12 sps:$4 sm:$0xff]  }
   0x2   :  { %231 = vmatprep.mubr.bf16.mxu0 %v455_v3  ;;  %199 = vmatprep.subr.bf16.mxu0 %v420_v1  ;;  %v424_v5 = vld [vmem:[%s566_s1 + $0x1c] ss:$12 sps:$4 sm:$0xff]   ;;  %v426_v6 = vld [vmem:[%s566_s1 + $0x20] ss:$12 sps:$4 sm:$0xff]   ;;  %v427_v7 = vld [vmem:[%s566_s1 + $0x18] ss:$12 sps:$4 sm:$0xff]  }
   0x3   :  { %398 = vmatpush3.bf16.msra.mxu1 %v422_v2  ;;  %200 = vmatpush1.bf16.msra.mxu0 %v423_v4  ;;  %v428_v8 = vld [vmem:[%s566_s1 + $0x34] ss:$12 sps:$4 sm:$0xff]   ;;  %v430_v9 = vld [vmem:[%s566_s1 + $0x38] ss:$12 sps:$4 sm:$0xff]   ;;  %v431_v10 = vld [vmem:[%s566_s1 + $0x30] ss:$12 sps:$4 sm:$0xff]  }
   0x4   :  { %399 = vmatprep.subr.bf16.mxu1 %v453_v0  ;;  %201 = vmatprep.subr.bf16.mxu0 %v424_v5  ;;  %v432_v11 = vld [vmem:[%s566_s1 + $0x4c] ss:$12 sps:$4 sm:$0xff]   ;;  %v434_v12 = vld [vmem:[%s566_s1 + $0x50] ss:$12 sps:$4 sm:$0xff]   ;;  %v435_v13 = vld [vmem:[%s566_s1 + $0x48] ss:$12 sps:$4 sm:$0xff]  }
   0x5   :  { %v436_v14 = vld [vmem:[%s566_s1 + $0x64] ss:$12 sps:$4 sm:$0xff]   ;;  %v438_v15 = vld [vmem:[%s566_s1 + $0x68] ss:$12 sps:$4 sm:$0xff]   ;;  %v439_v16 = vld [vmem:[%s566_s1 + $0x60] ss:$12 sps:$4 sm:$0xff]  }
   0x6   :  { %v440_v17 = vld [vmem:[%s566_s1 + $0x7c] ss:$12 sps:$4 sm:$0xff]   ;;  %v442_v18 = vld [vmem:[%s566_s1 + $0x80] ss:$12 sps:$4 sm:$0xff]   ;;  %v443_v19 = vld [vmem:[%s566_s1 + $0x78] ss:$12 sps:$4 sm:$0xff]  }
   0x7   :  { %400 = vmatpush3.bf16.msra.mxu1 %v426_v6  ;;  %202 = vmatpush1.bf16.msra.mxu0 %v427_v7  ;;  %v444_v20 = vld [vmem:[%s566_s1 + $0x94] ss:$12 sps:$4 sm:$0xff]   ;;  %v446_v21 = vld [vmem:[%s566_s1 + $0x98] ss:$12 sps:$4 sm:$0xff]   ;;  %v447_v22 = vld [vmem:[%s566_s1 + $0x90] ss:$12 sps:$4 sm:$0xff]  }
   0x8   :  { %401 = vmatprep.subr.bf16.mxu1 %v453_v0  ;;  %203 = vmatprep.subr.bf16.mxu0 %v428_v8  ;;  %v448_v23 = vld [vmem:[%s566_s1 + $0xac] ss:$12 sps:$4 sm:$0xff]   ;;  %v450_v24 = vld [vmem:[%s566_s1 + $0xb0] ss:$12 sps:$4 sm:$0xff]   ;;  %v451_v25 = vld [vmem:[%s566_s1 + $0xa8] ss:$12 sps:$4 sm:$0xff]  }
   0x9   :  { %v452_v26 = vld [vmem:[%s567_s0] sm:$0xff]   ;;  %v307_v28 = vshrl.u32 %v306_v27, 7 }
   0xa   :  { %v304_v30 = vld [vmem:[%s568_s2] sm:$0x7] }
   0xb   :  { %402 = vmatpush3.bf16.msra.mxu1 %v430_v9  ;;  %204 = vmatpush1.bf16.msra.mxu0 %v431_v10  ;;  %v316_v29 = vsub.s32 2, %v307_v28  ;;  %v308_v31 = vsub.s32 0, %v307_v28  ;;  %v312_v32 = vsub.s32 1, %v307_v28 }
   0xc   :  { %403 = vmatprep.subr.bf16.mxu1 %v453_v0  ;;  %205 = vmatprep.subr.bf16.mxu0 %v432_v11 }
   0xd   :  { %v317_v33 = vrot.slane %v304_v30, %v316_v29  ;;  %v309_v34 = vrot.slane %v304_v30, %v308_v31  ;;  %v313_v35 = vrot.slane %v304_v30, %v312_v32 }
   0xf   :  { %404 = vmatpush3.bf16.msra.mxu1 %v434_v12  ;;  %206 = vmatpush1.bf16.msra.mxu0 %v435_v13 }
  0x10   :  { %405 = vmatprep.subr.bf16.mxu1 %v453_v0  ;;  %207 = vmatprep.subr.bf16.mxu0 %v436_v14 }
  0x13   :  { %406 = vmatpush3.bf16.msra.mxu1 %v438_v15  ;;  %208 = vmatpush1.bf16.msra.mxu0 %v439_v16 }
  0x14   :  { %407 = vmatprep.subr.bf16.mxu1 %v453_v0  ;;  %209 = vmatprep.subr.bf16.mxu0 %v440_v17 }
  0x17   :  { %408 = vmatpush3.bf16.msra.mxu1 %v442_v18  ;;  %210 = vmatpush1.bf16.msra.mxu0 %v443_v19 }
  0x18   :  { %409 = vmatprep.subr.bf16.mxu1 %v453_v0  ;;  %211 = vmatprep.subr.bf16.mxu0 %v444_v20 }
  0x1b   :  { %410 = vmatpush3.bf16.msra.mxu1 %v446_v21  ;;  %212 = vmatpush1.bf16.msra.mxu0 %v447_v22 }
  0x1c   :  { %411 = vmatprep.subr.bf16.mxu1 %v453_v0  ;;  %213 = vmatprep.subr.bf16.mxu0 %v448_v23 }
  0x1f   :  { %412 = vmatpush3.bf16.msra.mxu1 %v450_v24  ;;  %214 = vmatpush1.bf16.msra.mxu0 %v451_v25 }
  0x22   :  { %414 = vmatmul.mubr.bf16.vlgmr.msra.gmra.mrb[0].mxu1 %v452_v26  ;;  %232 = vmatmul.mubr.bf16.vlgmr.msra.gmra.mrb[0].mxu0 %v452_v26 }
  0xf5   :  { %v276_v36 = vpop.f32.mrb[0].mxu1  ;;  %v233_v38 = vpop.f32.mrb[0].mxu0 }
  0xf6   :  { %v323_v37 = vadd.f32 %v317_v33, %v276_v36  ;;  %v415_v39 = vpop.f32.mrb[1].mxu1  ;;  %v321_v40 = vadd.f32 %v309_v34, %v233_v38  ;;  %v235_v41 = vpop.f32.mrb[1].mxu0 }
  0xf7   :  { %v279_v42 = vpop.f32.mrb[2].mxu1  ;;  %v322_v44 = vadd.f32 %v313_v35, %v235_v41  ;;  %v237_v46 = vpop.f32.mrb[2].mxu0 }
  0xf8   :  { %v385_v43 = vpack.c.bf16 %v323_v37, %v323_v37  ;;  %v326_v45 = vadd.f32 %v317_v33, %v279_v42  ;;  %v416_v47 = vpop.f32.mrb[3].mxu1  ;;  %v324_v48 = vadd.f32 %v309_v34, %v237_v46  ;;  %v239_v49 = vpop.f32.mrb[3].mxu0 }
  0xf9   :  { %v384_v50 = vpack.c.bf16 %v322_v44, %v321_v40  ;;  %v325_v52 = vadd.f32 %v313_v35, %v239_v49 }
  0xfa   :  { %348 = vst [vmem:[%s569_s3 + $0x8] sm:$0xf] %v385_v43  ;;  %v387_v51 = vpack.c.bf16 %v326_v45, %v326_v45 }
  0xfb   :  { %347 = vst [vmem:[%s569_s3] sm:$0xff] %v384_v50  ;;  %v386_v53 = vpack.c.bf16 %v325_v52, %v324_v48 }
  0xfc   :  { %350 = vst [vmem:[%s569_s3 + $0x14] sm:$0xf] %v387_v51 }
  0xfd   :  { %349 = vst [vmem:[%s569_s3 + $0xc] sm:$0xff] %v386_v53 }

// kernel: dual_model_forward.41
= control target key start
LH: loop header
LB: loop body
LE: loop exit
PB: predicated region body
PF: predicated region fallthrough
CT: control target
= control target key end

     0   :  { %v314_v1 = vmov 0   ;;  %v191_v18 = vlaneseq  ;;  %s395_s1 = inlined_call_operand.vmem [shape: bf16[128,256], index: 1, kind: input, shape index: {}]   ;;  %s396_s0 = inlined_call_operand.vmem [shape: bf16[16,128], index: 0, kind: input, shape index: {}]   ;;  %s397_s2 = inlined_call_operand.vmem [shape: f32[1,256], index: 2, kind: input, shape index: {}]   ;;  %s398_s3 = inlined_call_operand.vmem [shape: bf16[16,256], index: 3, kind: output, shape index: {}]  }
   0x1   :  { %v281_v0 = vld [vmem:[%s395_s1 + $0x4] ss:$8 sps:$4 sm:$0xff]   ;;  %163 = vmatprep.mubr.bf16.mxu0 %v314_v1  ;;  %v283_v2 = vld [vmem:[%s395_s1] ss:$8 sps:$4 sm:$0xff]   ;;  %v284_v3 = vld [vmem:[%s395_s1 + $0x14] ss:$8 sps:$4 sm:$0xff]  }
   0x2   :  { %131 = vmatprep.subr.bf16.mxu0 %v281_v0  ;;  %v286_v4 = vld [vmem:[%s395_s1 + $0x10] ss:$8 sps:$4 sm:$0xff]   ;;  %v287_v5 = vld [vmem:[%s395_s1 + $0x24] ss:$8 sps:$4 sm:$0xff]   ;;  %v289_v6 = vld [vmem:[%s395_s1 + $0x20] ss:$8 sps:$4 sm:$0xff]  }
   0x3   :  { %132 = vmatpush1.bf16.msra.mxu0 %v283_v2  ;;  %v290_v7 = vld [vmem:[%s395_s1 + $0x34] ss:$8 sps:$4 sm:$0xff]   ;;  %v292_v8 = vld [vmem:[%s395_s1 + $0x30] ss:$8 sps:$4 sm:$0xff]   ;;  %v293_v9 = vld [vmem:[%s395_s1 + $0x44] ss:$8 sps:$4 sm:$0xff]  }
   0x4   :  { %133 = vmatprep.subr.bf16.mxu0 %v284_v3  ;;  %v295_v10 = vld [vmem:[%s395_s1 + $0x40] ss:$8 sps:$4 sm:$0xff]   ;;  %v296_v11 = vld [vmem:[%s395_s1 + $0x54] ss:$8 sps:$4 sm:$0xff]   ;;  %v298_v12 = vld [vmem:[%s395_s1 + $0x50] ss:$8 sps:$4 sm:$0xff]  }
   0x5   :  { %v299_v13 = vld [vmem:[%s395_s1 + $0x64] ss:$8 sps:$4 sm:$0xff]   ;;  %v301_v14 = vld [vmem:[%s395_s1 + $0x60] ss:$8 sps:$4 sm:$0xff]   ;;  %v302_v15 = vld [vmem:[%s395_s1 + $0x74] ss:$8 sps:$4 sm:$0xff]  }
   0x6   :  { %v304_v16 = vld [vmem:[%s395_s1 + $0x70] ss:$8 sps:$4 sm:$0xff]   ;;  %v305_v17 = vld [vmem:[%s396_s0] sm:$0xff]   ;;  %v192_v19 = vshrl.u32 %v191_v18, 7 }
   0x7   :  { %134 = vmatpush1.bf16.msra.mxu0 %v286_v4  ;;  %v189_v21 = vld [vmem:[%s397_s2] sm:$0x3] }
   0x8   :  { %135 = vmatprep.subr.bf16.mxu0 %v287_v5  ;;  %v193_v20 = vsub.s32 0, %v192_v19  ;;  %v197_v22 = vsub.s32 1, %v192_v19 }
   0xa   :  { %v194_v23 = vrot.slane %v189_v21, %v193_v20  ;;  %v198_v24 = vrot.slane %v189_v21, %v197_v22 }
   0xb   :  { %136 = vmatpush1.bf16.msra.mxu0 %v289_v6 }
   0xc   :  { %137 = vmatprep.subr.bf16.mxu0 %v290_v7 }
   0xf   :  { %138 = vmatpush1.bf16.msra.mxu0 %v292_v8 }
  0x10   :  { %139 = vmatprep.subr.bf16.mxu0 %v293_v9 }
  0x13   :  { %140 = vmatpush1.bf16.msra.mxu0 %v295_v10 }
  0x14   :  { %141 = vmatprep.subr.bf16.mxu0 %v296_v11 }
  0x17   :  { %142 = vmatpush1.bf16.msra.mxu0 %v298_v12 }
  0x18   :  { %143 = vmatprep.subr.bf16.mxu0 %v299_v13 }
  0x1b   :  { %144 = vmatpush1.bf16.msra.mxu0 %v301_v14 }
  0x1c   :  { %145 = vmatprep.subr.bf16.mxu0 %v302_v15 }
  0x1f   :  { %146 = vmatpush1.bf16.msra.mxu0 %v304_v16 }
  0x22   :  { %164 = vmatmul.mubr.bf16.vlgmr.msra.gmra.mrb[0].mxu0 %v305_v17 }
  0xf5   :  { %v165_v25 = vpop.f32.mrb[0].mxu0 }
  0xf6   :  { %v201_v26 = vadd.f32 %v194_v23, %v165_v25  ;;  %v167_v27 = vpop.f32.mrb[1].mxu0 }
  0xf7   :  { %v202_v28 = vadd.f32 %v198_v24, %v167_v27  ;;  %v169_v29 = vpop.f32.mrb[2].mxu0 }
  0xf8   :  { %v205_v30 = vmul.f32 %v201_v26, %v201_v26  ;;  %v203_v31 = vadd.f32 %v194_v23, %v169_v29  ;;  %v171_v32 = vpop.f32.mrb[3].mxu0 }
  0xf9   :  { %v206_v33 = vmul.f32 %v202_v28, %v202_v28  ;;  %v204_v34 = vadd.f32 %v198_v24, %v171_v32 }
  0xfa   :  { %v209_v35 = vmul.f32 %v205_v30, %v201_v26  ;;  %v207_v36 = vmul.f32 %v203_v31, %v203_v31 }
  0xfb   :  { %v210_v37 = vmul.f32 %v206_v33, %v202_v28  ;;  %v208_v38 = vmul.f32 %v204_v34, %v204_v34 }
  0xfc   :  { %v213_v39 = vmul.f32 0.044715, %v209_v35  ;;  %v211_v40 = vmul.f32 %v207_v36, %v203_v31 }
  0xfd   :  { %v214_v41 = vmul.f32 0.044715, %v210_v37  ;;  %v212_v42 = vmul.f32 %v208_v38, %v204_v34 }
  0xfe   :  { %v217_v43 = vadd.f32 %v213_v39, %v201_v26  ;;  %v215_v44 = vmul.f32 0.044715, %v211_v40 }
  0xff   :  { %v218_v45 = vadd.f32 %v214_v41, %v202_v28  ;;  %v216_v46 = vmul.f32 0.044715, %v212_v42 }
 0x100   :  { %v221_v47 = vmul.f32 0.7978846, %v217_v43  ;;  %v219_v48 = vadd.f32 %v215_v44, %v203_v31 }
 0x101   :  { %v222_v49 = vmul.f32 0.7978846, %v218_v45  ;;  %v220_v50 = vadd.f32 %v216_v46, %v204_v34 }
 0x102   :  { %306 = vtanh.f32 %v221_v47  ;;  %v223_v51 = vmul.f32 0.7978846, %v219_v48 }
 0x103   :  { %308 = vtanh.f32 %v222_v49  ;;  %v224_v52 = vmul.f32 0.7978846, %v220_v50 }
 0x104   :  { %310 = vtanh.f32 %v223_v51 }
 0x105   :  { %312 = vtanh.f32 %v224_v52 }
 0x10c   :  { %v307_v53 = vpop.eup %306 }
 0x10d   :  { %v309_v54 = vpop.eup %308  ;;  %v229_v55 = vadd.f32 1.0, %v307_v53 }
 0x10e   :  { %v311_v56 = vpop.eup %310  ;;  %v230_v57 = vadd.f32 1.0, %v309_v54 }
 0x10f   :  { %v313_v58 = vpop.eup %312  ;;  %v233_v59 = vmul.f32 0.5, %v229_v55  ;;  %v231_v60 = vadd.f32 1.0, %v311_v56 }
 0x110   :  { %v234_v61 = vmul.f32 0.5, %v230_v57  ;;  %v232_v62 = vadd.f32 1.0, %v313_v58 }
 0x111   :  { %v237_v63 = vmul.f32 %v233_v59, %v201_v26  ;;  %v235_v0 = vmul.f32 0.5, %v231_v60 }
 0x112   :  { %v238_v1 = vmul.f32 %v234_v61, %v202_v28  ;;  %v236_v2 = vmul.f32 0.5, %v232_v62 }
 0x113   :  { %v239_v3 = vmul.f32 %v235_v0, %v203_v31 }
 0x114   :  { %v278_v4 = vpack.c.bf16 %v238_v1, %v237_v63  ;;  %v240_v5 = vmul.f32 %v236_v2, %v204_v34 }
 0x116   :  { %253 = vst [vmem:[%s398_s3] sm:$0xff] %v278_v4  ;;  %v279_v6 = vpack.c.bf16 %v240_v5, %v239_v3 }
 0x118   :  { %254 = vst [vmem:[%s398_s3 + $0x8] sm:$0xff] %v279_v6 }

// kernel: dual_model_forward.49
= control target key start
LH: loop header
LB: loop body
LE: loop exit
PB: predicated region body
PF: predicated region fallthrough
CT: control target
= control target key end

     0   :  { %s648_s0 = inlined_call_operand.vmem [shape: f32[2,128], index: 0, kind: input, shape index: {}]   ;;  %s649_s1 = inlined_call_operand.vmem [shape: f32[2,128], index: 1, kind: input, shape index: {}]   ;;  %s650_s2 = inlined_call_operand.vmem [shape: f32[512,128], index: 2, kind: input, shape index: {}]   ;;  %s651_s3 = inlined_call_operand.vmem [shape: f32[1,128], index: 3, kind: input, shape index: {}]   ;;  %s652_s4 = inlined_call_operand.hbm [shape: f32[2,128], index: 4, kind: output, shape index: {}]  }
   0x1   :  { %v39_v0 = vld [vmem:[%s650_s2 + $0x80] sm:$0xff]  ;;  %v40_v1 = vld [vmem:[%s650_s2 + $0x88] sm:$0xff]  ;;  %v41_v11 = vld [vmem:[%s650_s2 + $0x90] sm:$0xff] }
   0x2   :  { %v23_v2 = vld [vmem:[%s650_s2] sm:$0xff]  ;;  %v320_v3 = vpack.c.bf16 %v40_v1, %v39_v0  ;;  %v24_v4 = vld [vmem:[%s650_s2 + $0x8] sm:$0xff]  ;;  %v42_v13 = vld [vmem:[%s650_s2 + $0x98] sm:$0xff] }
   0x3   :  { %v71_v5 = vld [vmem:[%s650_s2 + $0x180] sm:$0xff]  ;;  %v72_v6 = vld [vmem:[%s650_s2 + $0x188] sm:$0xff]  ;;  %v322_v7 = vpack.c.bf16 %v24_v4, %v23_v2  ;;  %v25_v14 = vld [vmem:[%s650_s2 + $0x10] sm:$0xff]  ;;  %v324_v16 = vpack.c.bf16 %v42_v13, %v41_v11 }
   0x4   :  { %v352_v8 = vpack.c.bf16 %v72_v6, %v71_v5  ;;  %v55_v9 = vld [vmem:[%s650_s2 + $0x100] sm:$0xff]  ;;  %v56_v10 = vld [vmem:[%s650_s2 + $0x108] sm:$0xff]  ;;  %321 = vmatprep.subr.bf16.mxu0 %v320_v3  ;;  %v26_v15 = vld [vmem:[%s650_s2 + $0x18] sm:$0xff] }
   0x5   :  { %v354_v12 = vpack.c.bf16 %v56_v10, %v55_v9  ;;  %323 = vmatpush3.bf16.msra.mxu0 %v322_v7  ;;  %v326_v17 = vpack.c.bf16 %v26_v15, %v25_v14  ;;  %v73_v18 = vld [vmem:[%s650_s2 + $0x190] sm:$0xff]  ;;  %v74_v19 = vld [vmem:[%s650_s2 + $0x198] sm:$0xff]  ;;  %v43_v23 = vld [vmem:[%s650_s2 + $0xa0] sm:$0xff] }
   0x6   :  { %353 = vmatprep.subr.bf16.mxu1 %v352_v8  ;;  %v57_v20 = vld [vmem:[%s650_s2 + $0x110] sm:$0xff]  ;;  %v356_v21 = vpack.c.bf16 %v74_v19, %v73_v18  ;;  %v58_v22 = vld [vmem:[%s650_s2 + $0x118] sm:$0xff]  ;;  %v44_v24 = vld [vmem:[%s650_s2 + $0xa8] sm:$0xff]  ;;  %325 = vmatprep.subr.bf16.mxu0 %v324_v16 }
   0x7   :  { %355 = vmatpush3.bf16.msra.mxu1 %v354_v12  ;;  %v358_v25 = vpack.c.bf16 %v58_v22, %v57_v20  ;;  %v328_v26 = vpack.c.bf16 %v44_v24, %v43_v23  ;;  %v27_v27 = vld [vmem:[%s650_s2 + $0x20] sm:$0xff]  ;;  %v28_v28 = vld [vmem:[%s650_s2 + $0x28] sm:$0xff]  ;;  %v45_v35 = vld [vmem:[%s650_s2 + $0xb0] sm:$0xff] }
   0x8   :  { %v75_v29 = vld [vmem:[%s650_s2 + $0x1a0] sm:$0xff]  ;;  %357 = vmatprep.subr.bf16.mxu1 %v356_v21  ;;  %v76_v30 = vld [vmem:[%s650_s2 + $0x1a8] sm:$0xff]  ;;  %v330_v33 = vpack.c.bf16 %v28_v28, %v27_v27  ;;  %v46_v36 = vld [vmem:[%s650_s2 + $0xb8] sm:$0xff] }
   0x9   :  { %v59_v31 = vld [vmem:[%s650_s2 + $0x120] sm:$0xff]  ;;  %v60_v32 = vld [vmem:[%s650_s2 + $0x128] sm:$0xff]  ;;  %327 = vmatpush3.bf16.msra.mxu0 %v326_v17  ;;  %v360_v34 = vpack.c.bf16 %v76_v30, %v75_v29  ;;  %v29_v37 = vld [vmem:[%s650_s2 + $0x30] sm:$0xff]  ;;  %v332_v39 = vpack.c.bf16 %v46_v36, %v45_v35 }
   0xa   :  { %329 = vmatprep.subr.bf16.mxu0 %v328_v26  ;;  %v362_v38 = vpack.c.bf16 %v60_v32, %v59_v31  ;;  %v30_v40 = vld [vmem:[%s650_s2 + $0x38] sm:$0xff]  ;;  %v77_v41 = vld [vmem:[%s650_s2 + $0x1b0] sm:$0xff]  ;;  %v47_v46 = vld [vmem:[%s650_s2 + $0xc0] sm:$0xff] }
   0xb   :  { %359 = vmatpush3.bf16.msra.mxu1 %v358_v25  ;;  %v78_v42 = vld [vmem:[%s650_s2 + $0x1b8] sm:$0xff]  ;;  %v61_v44 = vld [vmem:[%s650_s2 + $0x130] sm:$0xff]  ;;  %v48_v47 = vld [vmem:[%s650_s2 + $0xc8] sm:$0xff]  ;;  %v334_v48 = vpack.c.bf16 %v30_v40, %v29_v37 }
   0xc   :  { %361 = vmatprep.subr.bf16.mxu1 %v360_v34  ;;  %v364_v43 = vpack.c.bf16 %v78_v42, %v77_v41  ;;  %v62_v45 = vld [vmem:[%s650_s2 + $0x138] sm:$0xff]  ;;  %v79_v49 = vld [vmem:[%s650_s2 + $0x1c0] sm:$0xff]  ;;  %v80_v50 = vld [vmem:[%s650_s2 + $0x1c8] sm:$0xff]  ;;  %v336_v52 = vpack.c.bf16 %v48_v47, %v47_v46 }
   0xd   :  { %331 = vmatpush3.bf16.msra.mxu0 %v330_v33  ;;  %v366_v51 = vpack.c.bf16 %v62_v45, %v61_v44  ;;  %v31_v53 = vld [vmem:[%s650_s2 + $0x40] sm:$0xff]  ;;  %v32_v54 = vld [vmem:[%s650_s2 + $0x48] sm:$0xff]  ;;  %v368_v56 = vpack.c.bf16 %v80_v50, %v79_v49  ;;  %v49_v58 = vld [vmem:[%s650_s2 + $0xd0] sm:$0xff] }
   0xe   :  { %333 = vmatprep.subr.bf16.mxu0 %v332_v39  ;;  %v63_v55 = vld [vmem:[%s650_s2 + $0x140] sm:$0xff]  ;;  %v64_v57 = vld [vmem:[%s650_s2 + $0x148] sm:$0xff]  ;;  %v50_v59 = vld [vmem:[%s650_s2 + $0xd8] sm:$0xff]  ;;  %v338_v62 = vpack.c.bf16 %v32_v54, %v31_v53 }
   0xf   :  { %363 = vmatpush3.bf16.msra.mxu1 %v362_v38  ;;  %v81_v60 = vld [vmem:[%s650_s2 + $0x1d0] sm:$0xff]  ;;  %v82_v61 = vld [vmem:[%s650_s2 + $0x1d8] sm:$0xff]  ;;  %v370_v63 = vpack.c.bf16 %v64_v57, %v63_v55  ;;  %v340_v0 = vpack.c.bf16 %v50_v59, %v49_v58  ;;  %v51_v6 = vld [vmem:[%s650_s2 + $0xe0] sm:$0xff] }
  0x10   :  { %365 = vmatprep.subr.bf16.mxu1 %v364_v43  ;;  %v33_v1 = vld [vmem:[%s650_s2 + $0x50] sm:$0xff]  ;;  %v34_v2 = vld [vmem:[%s650_s2 + $0x58] sm:$0xff]  ;;  %v372_v4 = vpack.c.bf16 %v82_v61, %v81_v60  ;;  %v52_v7 = vld [vmem:[%s650_s2 + $0xe8] sm:$0xff] }
  0x11   :  { %335 = vmatpush3.bf16.msra.mxu0 %v334_v48  ;;  %v65_v3 = vld [vmem:[%s650_s2 + $0x150] sm:$0xff]  ;;  %v66_v5 = vld [vmem:[%s650_s2 + $0x158] sm:$0xff]  ;;  %v83_v8 = vld [vmem:[%s650_s2 + $0x1e0] sm:$0xff]  ;;  %v342_v10 = vpack.c.bf16 %v34_v2, %v33_v1  ;;  %v344_v15 = vpack.c.bf16 %v52_v7, %v51_v6 }
  0x12   :  { %337 = vmatprep.subr.bf16.mxu0 %v336_v52  ;;  %v84_v9 = vld [vmem:[%s650_s2 + $0x1e8] sm:$0xff]  ;;  %v35_v11 = vld [vmem:[%s650_s2 + $0x60] sm:$0xff]  ;;  %v374_v14 = vpack.c.bf16 %v66_v5, %v65_v3  ;;  %v53_v20 = vld [vmem:[%s650_s2 + $0xf0] sm:$0xff] }
  0x13   :  { %367 = vmatpush3.bf16.msra.mxu1 %v366_v51  ;;  %v36_v12 = vld [vmem:[%s650_s2 + $0x68] sm:$0xff]  ;;  %v67_v13 = vld [vmem:[%s650_s2 + $0x160] sm:$0xff]  ;;  %v376_v19 = vpack.c.bf16 %v84_v9, %v83_v8  ;;  %v54_v21 = vld [vmem:[%s650_s2 + $0xf8] sm:$0xff] }
  0x14   :  { %369 = vmatprep.subr.bf16.mxu1 %v368_v56  ;;  %v68_v16 = vld [vmem:[%s650_s2 + $0x168] sm:$0xff]  ;;  %v19_v17 = vld [vmem:[%s649_s1] sm:$0x3] }
  0x15   :  { %339 = vmatpush3.bf16.msra.mxu0 %v338_v62  ;;  %v18_v18 = vld [vmem:[%s648_s0] sm:$0x3]  ;;  %158 = vmatprep.mubr.f32.mxu0 %v19_v17 }
  0x16   :  { %341 = vmatprep.subr.bf16.mxu0 %v340_v0  ;;  %v21_v22 = vsub.f32 %v18_v18, %v19_v17 }
  0x17   :  { %371 = vmatpush3.bf16.msra.mxu1 %v370_v63 }
  0x18   :  { %373 = vmatprep.subr.bf16.mxu1 %v372_v4 }
  0x19   :  { %9 = vsyncpa [#allocation3], 0  ;;  %v85_v23 = vld [vmem:[%s650_s2 + $0x1f0] sm:$0xff]  ;;  %v86_v24 = vld [vmem:[%s650_s2 + $0x1f8] sm:$0xff]  ;;  %343 = vmatpush3.bf16.msra.mxu0 %v342_v10  ;;  %v346_v25 = vpack.c.bf16 %v36_v12, %v35_v11  ;;  %v22_v26 = vand.u32 2147483647, %v21_v22  ;;  %v378_v27 = vpack.c.bf16 %v68_v16, %v67_v13  ;;  %v348_v28 = vpack.c.bf16 %v54_v21, %v53_v20 }
  0x1a   :  { %345 = vmatprep.subr.bf16.mxu0 %v344_v15  ;;  %v37_v29 = vld [vmem:[%s650_s2 + $0x70] sm:$0xff]  ;;  %v38_v30 = vld [vmem:[%s650_s2 + $0x78] sm:$0xff]  ;;  %v380_v31 = vpack.c.bf16 %v86_v24, %v85_v23  ;;  %v20_v36 = vmul.f32 %v19_v17, %v18_v18  ;;  %v249_v38 = vld [vmem:[%s651_s3] ss:$0 sm:$0xff] }
  0x1b   :  { %375 = vmatpush3.bf16.msra.mxu1 %v374_v14  ;;  %v69_v32 = vld [vmem:[%s650_s2 + $0x170] sm:$0xff]  ;;  %v70_v33 = vld [vmem:[%s650_s2 + $0x178] sm:$0xff]  ;;  %228 = vmatprep.mubr.f32.mxu1 %v22_v26  ;;  %v350_v34 = vpack.c.bf16 %v38_v30, %v37_v29  ;;  %s409_s2 = smov [#allocation2]  }
  0x1c   :  { %377 = vmatprep.subr.bf16.mxu1 %v376_v19  ;;  %v382_v35 = vpack.c.bf16 %v70_v33, %v69_v32  ;;  %s241_s17 = sshll.u32 %s409_s2, 4  ;;  %s242_s17 = int_to_ptr.vmem [resolvable:$true] %s241_s17 }
  0x1d   :  { %347 = vmatpush3.bf16.msra.mxu0 %v346_v25  ;;  %s385_s18 = scalar_lea.vmem %s242_s17, 32  ;;  %p390_p1 = scmp.lt.s32.totalorder %s242_s17, %s242_s17 }
  0x1e   :  { %349 = vmatprep.subr.bf16.mxu0 %v348_v28  ;;  %p386_p0 = scmp.ne.s32.totalorder %s242_s17, %s385_s18  ;;  %p391_p2 = scmp.lt.s32.totalorder %s385_s18, %s385_s18 }
  0x1f   :  { %379 = vmatpush3.bf16.msra.mxu1 %v378_v27 }
  0x20   :  { %381 = vmatprep.subr.bf16.mxu1 %v380_v31  ;;  %p392_p3 = por %p391_p2, %p390_p1 }
  0x21   :  { %351 = vmatpush3.bf16.msra.mxu0 %v350_v34 }
  0x22   :  { %p393_p4 = pnand %p392_p3, %p386_p0 }
  0x23   :  { %383 = vmatpush3.bf16.msra.mxu1 %v382_v35 }
  0x24   :  { %159 = vmatmul.mubr.f32.vlgmr.msra.gmra.mrb[0].mxu0 %v18_v18 }
  0x26   :  { %229 = vmatmul.mubr.f32.vlgmr.msra.gmra.mrb[0].mxu1 %v20_v36 }
  0xf7   :  { %v282_v37 = vpop.f32.mrb[0].mxu0 }
  0xf8   :  { %v283_v39 = vpop.f32.mrb[1].mxu0 }
  0xf9   :  { %v317_v40 = vpop.f32.mrb[0].mxu1  ;;  %v284_v41 = vadd.f32 %v283_v39, %v282_v37 }
  0xfa   :  { %v318_v42 = vpop.f32.mrb[1].mxu1 }
  0xfb   :  { %v319_v43 = vadd.f32 %v318_v42, %v317_v40  ;;  %v161_v44 = vadd.f32 %v284_v41, %v249_v38 }
  0xfd   :  { %v231_v45 = vadd.f32 %v319_v43, %v161_v44 }
  0xff   :  { %234 = vst [vmem:[#allocation2] sm:$0x3] %v231_v45 }
 0x100   :  { %396 = shalt.err (!%p393_p4)
}
 0x101   :  { %s397_s20 = scalar_lea.hbm %s652_s4, 32 }
 0x102   :  { %p398_p5 = scmp.ne.s32.totalorder %s652_s4, %s397_s20  ;;  %p401_p6 = scmp.lt.u32.totalorder %s397_s20, %s652_s4 }
 0x104   :  { %p403_p7 = pnand %p401_p6, %p398_p5 }
 0x106   :  { %406 = shalt.err (!%p403_p7)
}
 0x107   :  { %244 = dma.vmem_to_hbm [thread:$0]  %s242_s17, 32, %s652_s4, [#allocation3]  }
 0x108   :  { %407 = dma.done.wait [#allocation3], 32  }
 0x109   :  { %408 = vsyncadd [#allocation3], 4294967264 }
 0x10a   :  { %248 = vsyncpa [#allocation3], 1 }

// kernel: dual_model_forward.48
= control target key start
LH: loop header
LB: loop body
LE: loop exit
PB: predicated region body
PF: predicated region fallthrough
CT: control target
= control target key end

     0   :  { %v196_v0 = vmov 0.0   ;;  %vm197_vm0 = vmmov 0   ;;  %s251_s1 = inlined_call_operand.vmem [shape: bf16[128,128], index: 1, kind: input, shape index: {}]   ;;  %s252_s0 = inlined_call_operand.vmem [shape: bf16[2,128], index: 0, kind: input, shape index: {}]   ;;  %s253_s2 = inlined_call_operand.vmem [shape: f32[1,128], index: 2, kind: input, shape index: {}]   ;;  %s254_s3 = inlined_call_operand.vmem [shape: f32[2,128], index: 3, kind: output, shape index: {}]  }
   0x1   :  { %164 = vmatprep.subr.bf16.mxu0 %v196_v0  ;;  %19 = vst [vmem:[#allocation2] sm:$0x3] %v196_v0  ;;  %v186_v1 = vld [vmem:[%s251_s1] sm:$0xff]   ;;  %180 = vmatprep.mubr.msk.bf16.mxu0 %vm197_vm0, %v196_v0  ;;  %v187_v2 = vld [vmem:[%s251_s1 + $0x8] sm:$0xff]   ;;  %v188_v3 = vld [vmem:[%s251_s1 + $0x10] sm:$0xff]  }
   0x2   :  { %165 = vmatpush3.bf16.msra.mxu0 %v186_v1  ;;  %v189_v4 = vld [vmem:[%s251_s1 + $0x18] sm:$0xff]   ;;  %v190_v5 = vld [vmem:[%s251_s1 + $0x20] sm:$0xff]   ;;  %v191_v6 = vld [vmem:[%s251_s1 + $0x28] sm:$0xff]  }
   0x3   :  { %166 = vmatprep.subr.bf16.mxu0 %v196_v0  ;;  %v192_v7 = vld [vmem:[%s251_s1 + $0x30] sm:$0xff]   ;;  %v193_v8 = vld [vmem:[%s251_s1 + $0x38] sm:$0xff]   ;;  %v21_v9 = vld [vmem:[%s252_s0] sm:$0x1] }
   0x4   :  { %v154_v16 = vld [vmem:[%s253_s2] ss:$0 sm:$0xff] }
   0x6   :  { %167 = vmatpush3.bf16.msra.mxu0 %v187_v2 }
   0x7   :  { %168 = vmatprep.subr.bf16.mxu0 %v196_v0 }
   0x8   :  { %v20_v10 = vld [vmem:[#allocation2] sm:$0x3] }
   0xa   :  { %169 = vmatpush3.bf16.msra.mxu0 %v188_v3 }
   0xb   :  { %170 = vmatprep.subr.bf16.mxu0 %v196_v0 }
   0xe   :  { %171 = vmatpush3.bf16.msra.mxu0 %v189_v4 }
   0xf   :  { %172 = vmatprep.subr.bf16.mxu0 %v196_v0 }
  0x12   :  { %173 = vmatpush3.bf16.msra.mxu0 %v190_v5 }
  0x13   :  { %174 = vmatprep.subr.bf16.mxu0 %v196_v0 }
  0x16   :  { %175 = vmatpush3.bf16.msra.mxu0 %v191_v6 }
  0x17   :  { %176 = vmatprep.subr.bf16.mxu0 %v196_v0 }
  0x1a   :  { %177 = vmatpush3.bf16.msra.mxu0 %v192_v7 }
  0x1b   :  { %178 = vmatprep.subr.bf16.mxu0 %v196_v0 }
  0x1e   :  { %179 = vmatpush3.bf16.msra.mxu0 %v193_v8 }
  0x21   :  { %181 = vmatmul.mubr.bf16.vlgmr.msra.gmra.mrb[0].mxu0 %v21_v9 }
  0xf4   :  { %v120_v11 = vpop.f32.mrb[0].mxu0 }
  0xf5   :  { %v126_v12 = vadd.f32 %v120_v11, %v20_v10  ;;  %v182_v13 = vpop.f32.mrb[1].mxu0 }
  0xf6   :  { %v123_v14 = vpop.f32.mrb[2].mxu0 }
  0xf7   :  { %127 = vst [vmem:[#allocation2] sm:$0x3] %v126_v12  ;;  %v183_v15 = vpop.f32.mrb[3].mxu0 }
  0xfe   :  { %v131_v17 = vld [vmem:[#allocation2] sm:$0x3] }
  0xff   :  { %v139_v18 = vadd.f32 %v154_v16, %v131_v17 }
 0x101   :  { %194 = vtanh.f32 %v139_v18 }
 0x10b   :  { %v195_v19 = vpop.eup %194 }
 0x10c   :  { %141 = vst [vmem:[%s254_s3] sm:$0x3] %v195_v19 }

// kernel: dual_model_forward.42
= control target key start
LH: loop header
LB: loop body
LE: loop exit
PB: predicated region body
PF: predicated region fallthrough
CT: control target
= control target key end

     0   :  { %s475_s1 = inlined_call_operand.vmem [shape: bf16[256,128], index: 1, kind: input, shape index: {}]   ;;  %s476_s0 = inlined_call_operand.vmem [shape: bf16[16,256], index: 0, kind: input, shape index: {}]   ;;  %s477_s3 = inlined_call_operand.vmem [shape: bf16[16,128], index: 3, kind: input, shape index: {}]   ;;  %s478_s2 = inlined_call_operand.vmem [shape: f32[1,128], index: 2, kind: input, shape index: {}]   ;;  %s479_s4 = inlined_call_operand.vmem [shape: f32[1,128], index: 4, kind: input, shape index: {}]   ;;  %s480_s5 = inlined_call_operand.vmem [shape: f32[1,128], index: 5, kind: input, shape index: {}]   ;;  %s481_s6 = inlined_call_operand.vmem [shape: bf16[16,128], index: 6, kind: output, shape index: {}]  }
   0x1   :  { %v348_v0 = vld [vmem:[%s475_s1 + $0x40] sm:$0xff]   ;;  %v350_v2 = vld [vmem:[%s475_s1 + $0x48] sm:$0xff]   ;;  %v352_v4 = vld [vmem:[%s475_s1 + $0x50] sm:$0xff]  }
   0x2   :  { %v349_v1 = vld [vmem:[%s475_s1] sm:$0xff]   ;;  %326 = vmatprep.subr.bf16.mxu0 %v348_v0  ;;  %v351_v3 = vld [vmem:[%s475_s1 + $0x8] sm:$0xff]   ;;  %v353_v5 = vld [vmem:[%s475_s1 + $0x10] sm:$0xff]  }
   0x3   :  { %327 = vmatpush3.bf16.msra.mxu0 %v349_v1  ;;  %v354_v6 = vld [vmem:[%s475_s1 + $0x58] sm:$0xff]   ;;  %v356_v8 = vld [vmem:[%s475_s1 + $0x60] sm:$0xff]   ;;  %v358_v10 = vld [vmem:[%s475_s1 + $0x68] sm:$0xff]  }
   0x4   :  { %328 = vmatprep.subr.bf16.mxu0 %v350_v2  ;;  %v355_v7 = vld [vmem:[%s475_s1 + $0x18] sm:$0xff]   ;;  %v357_v9 = vld [vmem:[%s475_s1 + $0x20] sm:$0xff]   ;;  %v359_v12 = vld [vmem:[%s475_s1 + $0x28] sm:$0xff]  }
   0x5   :  { %v366_v11 = vld [vmem:[%s476_s0 + $0x4] ss:$8 sps:$4 sm:$0xff]   ;;  %v360_v13 = vld [vmem:[%s475_s1 + $0x70] sm:$0xff]   ;;  %v362_v15 = vld [vmem:[%s475_s1 + $0x78] sm:$0xff]  }
   0x6   :  { %204 = vmatprep.mubr.bf16.mxu0 %v366_v11  ;;  %v361_v14 = vld [vmem:[%s475_s1 + $0x30] sm:$0xff]   ;;  %v363_v16 = vld [vmem:[%s475_s1 + $0x38] sm:$0xff]   ;;  %v364_v17 = vld [vmem:[%s476_s0] ss:$8 sps:$4 sm:$0xff]  }
   0x7   :  { %329 = vmatpush3.bf16.msra.mxu0 %v351_v3  ;;  %v318_v18 = vld [vmem:[%s477_s3] sm:$0xff]  }
   0x8   :  { %330 = vmatprep.subr.bf16.mxu0 %v352_v4  ;;  %v310_v21 = vld [vmem:[%s478_s2] ss:$0 sm:$0xff]  ;;  %v319_v24 = vunpack.c.l.bf16 %v318_v18  ;;  %v320_v30 = vunpack.c.h.bf16 %v318_v18 }
   0x9   :  { %v311_v48 = vld [vmem:[%s479_s4] ss:$0 sm:$0xff] }
   0xa   :  { %v312_v52 = vld [vmem:[%s480_s5] ss:$0 sm:$0xff] }
   0xb   :  { %331 = vmatpush3.bf16.msra.mxu0 %v353_v5 }
   0xc   :  { %332 = vmatprep.subr.bf16.mxu0 %v354_v6 }
   0xf   :  { %333 = vmatpush3.bf16.msra.mxu0 %v355_v7 }
  0x10   :  { %334 = vmatprep.subr.bf16.mxu0 %v356_v8 }
  0x13   :  { %335 = vmatpush3.bf16.msra.mxu0 %v357_v9 }
  0x14   :  { %336 = vmatprep.subr.bf16.mxu0 %v358_v10 }
  0x17   :  { %337 = vmatpush3.bf16.msra.mxu0 %v359_v12 }
  0x18   :  { %338 = vmatprep.subr.bf16.mxu0 %v360_v13 }
  0x1b   :  { %339 = vmatpush3.bf16.msra.mxu0 %v361_v14 }
  0x1c   :  { %340 = vmatprep.subr.bf16.mxu0 %v362_v15 }
  0x1f   :  { %341 = vmatpush3.bf16.msra.mxu0 %v363_v16 }
  0x22   :  { %205 = vmatmul.mubr.bf16.vlgmr.msra.gmra.mrb[0].mxu0 %v364_v17 }
  0xf5   :  { %v342_v19 = vpop.f32.mrb[0].mxu0 }
  0xf6   :  { %v343_v20 = vpop.f32.mrb[1].mxu0 }
  0xf7   :  { %v344_v22 = vadd.f32 %v343_v20, %v342_v19  ;;  %v345_v23 = vpop.f32.mrb[2].mxu0 }
  0xf8   :  { %v346_v25 = vpop.f32.mrb[3].mxu0 }
  0xf9   :  { %v229_v26 = vadd.f32 %v344_v22, %v310_v21  ;;  %v347_v27 = vadd.f32 %v346_v25, %v345_v23 }
  0xfb   :  { %v230_v28 = vadd.f32 %v347_v27, %v310_v21  ;;  %v235_v29 = vadd.f32 %v319_v24, %v229_v26 }
  0xfd   :  { %237 = vadd.xlane.f32.xlu0 %v235_v29  ;;  %v236_v31 = vadd.f32 %v320_v30, %v230_v28 }
 0x101   :  { %239 = vadd.xlane.f32.xlu0 %v236_v31 }
 0x18a   :  { %v238_v32 = vpop.xlane.xlu0 %237 }
 0x18b   :  { %v242_v33 = vmul.f32 0.0078125, %v238_v32 }
 0x18d   :  { %v244_v34 = vsub.f32 %v235_v29, %v242_v33 }
 0x18e   :  { %v240_v35 = vpop.xlane.xlu0 %239 }
 0x18f   :  { %v243_v36 = vmul.f32 0.0078125, %v240_v35  ;;  %v246_v37 = vmul.f32 %v244_v34, %v244_v34 }
 0x191   :  { %v245_v38 = vsub.f32 %v236_v31, %v243_v36  ;;  %248 = vadd.xlane.f32.xlu1 %v246_v37 }
 0x193   :  { %v247_v39 = vmul.f32 %v245_v38, %v245_v38 }
 0x195   :  { %250 = vadd.xlane.f32.xlu1 %v247_v39 }
 0x21e   :  { %v249_v40 = vpop.xlane.xlu1 %248 }
 0x21f   :  { %v252_v41 = vmul.f32 0.0078125, %v249_v40 }
 0x221   :  { %v254_v42 = vadd.f32 1e-12, %v252_v41 }
 0x222   :  { %v251_v43 = vpop.xlane.xlu1 %250 }
 0x223   :  { %367 = vrsqrt.f32 %v254_v42  ;;  %v253_v44 = vmul.f32 0.0078125, %v251_v43 }
 0x225   :  { %v255_v45 = vadd.f32 1e-12, %v253_v44 }
 0x227   :  { %369 = vrsqrt.f32 %v255_v45 }
 0x22d   :  { %v368_v46 = vpop.eup %367 }
 0x22e   :  { %v258_v47 = vmul.f32 %v368_v46, %v244_v34 }
 0x230   :  { %v267_v50 = vmul.f32 %v311_v48, %v258_v47 }
 0x231   :  { %v370_v49 = vpop.eup %369 }
 0x232   :  { %v259_v51 = vmul.f32 %v370_v49, %v245_v38  ;;  %v276_v54 = vadd.f32 %v312_v52, %v267_v50 }
 0x234   :  { %v268_v53 = vmul.f32 %v311_v48, %v259_v51 }
 0x236   :  { %v277_v55 = vadd.f32 %v312_v52, %v268_v53 }
 0x238   :  { %v324_v56 = vpack.c.bf16 %v277_v55, %v276_v54 }
 0x23a   :  { %325 = vst [vmem:[%s481_s6] sm:$0xff] %v324_v56  }

</bundles_post_ra>
